<compile_context>
chip_gen: v7x
topology: tpu7x:2x2x1
jax: 0.10.0
libtpu: 0.0.40
codegen_flags: <defaults>
</compile_context>

<pallas_src>
import jax
import jax.numpy as jnp
from jax.experimental import pallas as pl
from jax.experimental.pallas import tpu as pltpu

# ---- SpatialGuidanceModel default hyper-parameters ----
INPUT_DIM = 3
PADDED_IN = 8                      # input_dim zero-padded to a sublane multiple
EMBED_DIM = 64
NUM_HEADS = 4
HEAD_DIM = EMBED_DIM // NUM_HEADS  # 16
FFN_HIDDEN = 128
OUTPUT_DIM = 768
LORA_R = 16
LORA_ALPHA = 1.0
SCALING = LORA_ALPHA / LORA_R
SAMPLE_RATE = 8                    # pool='Mean' (SpatialGuidanceModel default)


# ----------------------------------------------------------------------------
# Fused kernel: one grid step == one point cloud
# ----------------------------------------------------------------------------
def _guidance_kernel(pt_ref, p_ref, wq_ref, bq_ref, wkv_ref, bkv_ref,
                     wo_ref, w1_ref, b1_ref, w2_ref, b2_ref, o_ref):
    pt = pt_ref[0]                   # (M, PADDED_IN) sampled queries
    p = p_ref[0]                     # (N, PADDED_IN) full point cloud

    # embedding + LoRA q / (k|v) projections folded into single matmuls in the
    # wrapper; the query weight also carries 1/sqrt(head_dim).
    q = jnp.dot(pt, wq_ref[...],
                preferred_element_type=jnp.float32) + bq_ref[...]      # (M, E)
    kv = jnp.dot(p, wkv_ref[...],
                 preferred_element_type=jnp.float32) + bkv_ref[...]    # (N, 2E)

    wo_t = wo_ref[...]               # (E, E), already transposed to (in, out)
    inv_m = 1.0 / float(q.shape[0])

    # pool='Mean' over query rows commutes with the (softmax @ V) matmul and
    # the linear out_proj, so pool BEFORE those matmuls:
    #   mean_m( sum_h softmax(S_h) V_h Wo_h ) = sum_h (mean_m softmax(S_h)) V_h Wo_h
    pooled = jnp.zeros((1, EMBED_DIM), jnp.float32)
    for h in range(NUM_HEADS):                        # H=4, unrolled
        lo = h * HEAD_DIM
        hi = lo + HEAD_DIM
        qh = q[:, lo:hi]                              # (M, D), pre-scaled
        kh = kv[:, lo:hi]                             # (N, D)
        vh = kv[:, EMBED_DIM + lo:EMBED_DIM + hi]     # (N, D)
        s = jnp.einsum("md,nd->mn", qh, kh,
                       preferred_element_type=jnp.float32)             # (M, N)
        s = s - jnp.max(s, axis=-1, keepdims=True)
        e = jnp.exp(s)
        w = e * pl.reciprocal(jnp.sum(e, axis=-1, keepdims=True))      # softmax
        w_mean = jnp.sum(w, axis=0, keepdims=True) * inv_m             # (1, N)
        ph = jnp.dot(w_mean, vh, preferred_element_type=jnp.float32)   # (1, D)
        pooled = pooled + jnp.dot(ph, wo_t[lo:hi, :],
                                  preferred_element_type=jnp.float32)  # (1, E)

    # ffn: Linear(E, 128) -> ReLU -> Linear(128, OUTPUT_DIM)
    # (out_proj bias is folded into b1 in the wrapper)
    h1 = jnp.maximum(
        jnp.dot(pooled, w1_ref[...], preferred_element_type=jnp.float32)
        + b1_ref[...], 0.0)                                            # (1, 128)
    out = (jnp.dot(h1, w2_ref[...], preferred_element_type=jnp.float32)
           + b2_ref[...])                                              # (1, 768)
    o_ref[0] = out


# ----------------------------------------------------------------------------
# Wrapper: trace-time weight preprocessing + single pallas_call
# ----------------------------------------------------------------------------
def spatial_guidance_forward(P, P_tilde, params):
    B, N, _ = P.shape
    M = P_tilde.shape[1]

    def fold(w, a, b):
        # x @ W.T + scaling*((x @ A.T) @ B.T) == x @ (W + scaling * B @ A).T
        return w + SCALING * (b @ a)

    pad = PADDED_IN - INPUT_DIM
    we_t = jnp.pad(params["we"].T, ((0, pad), (0, 0)))                # (8, E)
    be = params["be"].reshape(1, EMBED_DIM)
    inv_sqrt_d = 1.0 / float(HEAD_DIM) ** 0.5

    wq_t = fold(params["wq"], params["aq"], params["bq"]).T * inv_sqrt_d  # (E,E)
    wk_t = fold(params["wk"], params["ak"], params["bk"]).T
    wv_t = fold(params["wv"], params["av"], params["bv"]).T
    wkv_t = jnp.concatenate([wk_t, wv_t], axis=1)                     # (E, 2E)

    # Fold the embedding linear into the q / fused-kv projections:
    #   (x @ We_t + be) @ Wp_t == x @ (We_t @ Wp_t) + (be @ Wp_t)
    wq_c = we_t @ wq_t                                                # (8, E)
    bq_c = be @ wq_t                                                  # (1, E)
    wkv_c = we_t @ wkv_t                                              # (8, 2E)
    bkv_c = be @ wkv_t                                                # (1, 2E)

    wo_t = params["wo"].T                                             # (E, E)
    bo = params["bo"].reshape(1, EMBED_DIM)
    w1_t = params["w1"].T                                             # (E, 128)
    # out_proj bias is constant over query rows -> fold into FFN layer-1 bias
    b1 = params["b1"].reshape(1, FFN_HIDDEN) + bo @ w1_t
    w2_t = params["w2"].T                                             # (128, 768)
    b2 = params["b2"].reshape(1, OUTPUT_DIM)

    P_pad = jnp.pad(P, ((0, 0), (0, 0), (0, pad)))
    Pt_pad = jnp.pad(P_tilde, ((0, 0), (0, 0), (0, pad)))

    def full(shape):
        rank = len(shape)
        return pl.BlockSpec(shape, lambda b, rank=rank: (0,) * rank)

    out = pl.pallas_call(
        _guidance_kernel,
        out_shape=jax.ShapeDtypeStruct((B, 1, OUTPUT_DIM), jnp.float32),
        grid=(B,),
        in_specs=[
            pl.BlockSpec((1, M, PADDED_IN), lambda b: (b, 0, 0)),   # P_tilde
            pl.BlockSpec((1, N, PADDED_IN), lambda b: (b, 0, 0)),   # P
            full((PADDED_IN, EMBED_DIM)),            # embedding+LoRA-q weight
            full((1, EMBED_DIM)),                    # folded q bias
            full((PADDED_IN, 2 * EMBED_DIM)),        # embedding + fused k|v weight
            full((1, 2 * EMBED_DIM)),                # folded k|v bias
            full((EMBED_DIM, EMBED_DIM)),            # out_proj weight (K, N)
            full((EMBED_DIM, FFN_HIDDEN)),           # ffn layer 1 weight
            full((1, FFN_HIDDEN)),                   # ffn layer 1 bias (+ bo folded)
            full((FFN_HIDDEN, OUTPUT_DIM)),          # ffn layer 2 weight
            full((1, OUTPUT_DIM)),                   # ffn layer 2 bias
        ],
        out_specs=pl.BlockSpec((1, 1, OUTPUT_DIM), lambda b: (b, 0, 0)),
        compiler_params=pltpu.CompilerParams(
            dimension_semantics=("parallel",)),
    )(Pt_pad, P_pad, wq_c, bq_c, wkv_c, bkv_c, wo_t, w1_t, b1, w2_t, b2)
    return out.reshape(B, OUTPUT_DIM)


# ----------------------------------------------------------------------------
# Pure-JAX reference (faithful, unfused PyTorch math) for correctness check
# ----------------------------------------------------------------------------
def spatial_guidance_ref(P, P_tilde, p):
    B, N, _ = P.shape
    M = P_tilde.shape[1]

    def lora(x, w, a, b):
        return x @ w.T + SCALING * ((x @ a.T) @ b.T)

    outs = []
    for i in range(B):
        pe = P[i] @ p["we"].T + p["be"]                    # (N, E)
        pte = P_tilde[i] @ p["we"].T + p["be"]             # (M, E)
        q = lora(pte, p["wq"], p["aq"], p["bq"])
        k = lora(pe, p["wk"], p["ak"], p["bk"])
        v = lora(pe, p["wv"], p["av"], p["bv"])
        qh = q.reshape(M, NUM_HEADS, HEAD_DIM).transpose(1, 0, 2)
        kh = k.reshape(N, NUM_HEADS, HEAD_DIM).transpose(1, 0, 2)
        vh = v.reshape(N, NUM_HEADS, HEAD_DIM).transpose(1, 0, 2)
        s = jnp.einsum("hmd,hnd->hmn", qh, kh) / jnp.sqrt(jnp.float32(HEAD_DIM))
        w = jax.nn.softmax(s, axis=-1)
        o = jnp.einsum("hmn,hnd->hmd", w, vh).transpose(1, 0, 2).reshape(M, EMBED_DIM)
        o = o @ p["wo"].T + p["bo"]
        lat = o.mean(axis=0)                               # pool='Mean'
        h1 = jax.nn.relu(lat @ p["w1"].T + p["b1"])
        outs.append(h1 @ p["w2"].T + p["b2"])
    return jnp.stack(outs)


if __name__ == "__main__":
    B, N = 2, 64
    M = N // SAMPLE_RATE
    keys = jax.random.split(jax.random.PRNGKey(0), 24)

    P = jax.random.normal(keys[0], (B, N, INPUT_DIM), jnp.float32)

    def pk(i, shape, scale=0.1):
        return scale * jax.random.normal(keys[i], shape, jnp.float32)

    # Deterministic synthetic weights. PyTorch zero-inits lora_B; small random
    # values are used instead so the LoRA branch is numerically exercised.
    params = {
        "we": pk(1, (EMBED_DIM, INPUT_DIM)), "be": pk(2, (EMBED_DIM,)),
        "wq": pk(3, (EMBED_DIM, EMBED_DIM)),
        "aq": pk(4, (LORA_R, EMBED_DIM)), "bq": pk(5, (EMBED_DIM, LORA_R)),
        "wk": pk(6, (EMBED_DIM, EMBED_DIM)),
        "ak": pk(7, (LORA_R, EMBED_DIM)), "bk": pk(8, (EMBED_DIM, LORA_R)),
        "wv": pk(9, (EMBED_DIM, EMBED_DIM)),
        "av": pk(10, (LORA_R, EMBED_DIM)), "bv": pk(11, (EMBED_DIM, LORA_R)),
        "wo": pk(12, (EMBED_DIM, EMBED_DIM)), "bo": pk(13, (EMBED_DIM,)),
        "w1": pk(14, (FFN_HIDDEN, EMBED_DIM)), "b1": pk(15, (FFN_HIDDEN,)),
        "w2": pk(16, (OUTPUT_DIM, FFN_HIDDEN)), "b2": pk(17, (OUTPUT_DIM,)),
    }

    # TODO(synk): random point subsampling (np.random.choice in sample()) is a
    # data-dependent gather; it is done wrapper-side with jax.random, not in the kernel.
    idx_keys = jax.random.split(keys[18], B)
    sample_idx = jnp.stack(
        [jax.random.permutation(idx_keys[i], N)[:M] for i in range(B)])
    P_tilde = jnp.stack([P[i][sample_idx[i]] for i in range(B)])       # (B, M, 3)

    out = jax.jit(spatial_guidance_forward)(P, P_tilde, params)
    jax.block_until_ready(out)

    ref = spatial_guidance_ref(P, P_tilde, params)
    assert out.shape == (B, OUTPUT_DIM)
    assert jnp.allclose(out, ref, atol=1e-4, rtol=1e-4), "mismatch vs reference"

    print("KERNEL_OK")
</pallas_src>

<mosaic_0001>
module attributes {stable_mosaic.version = 11 : i64} {
  func.func @_guidance_kernel(%arg0: i32, %arg1: memref<1x8x8xf32, #tpu.memory_space<vmem>>, %arg2: memref<1x64x8xf32, #tpu.memory_space<vmem>>, %arg3: memref<8x64xf32, #tpu.memory_space<vmem>>, %arg4: memref<1x64xf32, #tpu.memory_space<vmem>>, %arg5: memref<8x128xf32, #tpu.memory_space<vmem>>, %arg6: memref<1x128xf32, #tpu.memory_space<vmem>>, %arg7: memref<64x64xf32, #tpu.memory_space<vmem>>, %arg8: memref<64x128xf32, #tpu.memory_space<vmem>>, %arg9: memref<1x128xf32, #tpu.memory_space<vmem>>, %arg10: memref<128x768xf32, #tpu.memory_space<vmem>>, %arg11: memref<1x768xf32, #tpu.memory_space<vmem>>, %arg12: memref<1x1x768xf32, #tpu.memory_space<vmem>>) attributes {dimension_semantics = [#tpu.dimension_semantics<parallel>], iteration_bounds = array<i64: 2>, scalar_prefetch = 0 : i64, scratch_operands = 0 : i64, tpu.core_type = #tpu.core_type<tc>, window_params = [{transform_indices = @transform_0, window_bounds = array<i64: 1, 8, 8>}, {transform_indices = @transform_1, window_bounds = array<i64: 1, 64, 8>}, {pipeline_mode = #tpu.pipeline_mode<synchronous>, transform_indices = @transform_2, window_bounds = array<i64: 8, 64>}, {pipeline_mode = #tpu.pipeline_mode<synchronous>, transform_indices = @transform_3, window_bounds = array<i64: 1, 64>}, {pipeline_mode = #tpu.pipeline_mode<synchronous>, transform_indices = @transform_4, window_bounds = array<i64: 8, 128>}, {pipeline_mode = #tpu.pipeline_mode<synchronous>, transform_indices = @transform_5, window_bounds = array<i64: 1, 128>}, {pipeline_mode = #tpu.pipeline_mode<synchronous>, transform_indices = @transform_6, window_bounds = array<i64: 64, 64>}, {pipeline_mode = #tpu.pipeline_mode<synchronous>, transform_indices = @transform_7, window_bounds = array<i64: 64, 128>}, {pipeline_mode = #tpu.pipeline_mode<synchronous>, transform_indices = @transform_8, window_bounds = array<i64: 1, 128>}, {pipeline_mode = #tpu.pipeline_mode<synchronous>, transform_indices = @transform_9, window_bounds = array<i64: 128, 768>}, {pipeline_mode = #tpu.pipeline_mode<synchronous>, transform_indices = @transform_10, window_bounds = array<i64: 1, 768>}, {transform_indices = @transform_11, window_bounds = array<i64: 1, 1, 768>}]} {
    %c0 = arith.constant 0 : index
    %c0_0 = arith.constant 0 : index
    %c0_1 = arith.constant 0 : index
    %0 = vector.load %arg1[%c0, %c0_0, %c0_1] : memref<1x8x8xf32, #tpu.memory_space<vmem>>, vector<1x8x8xf32>
    %1 = vector.shape_cast %0 : vector<1x8x8xf32> to vector<8x8xf32>
    %c0_2 = arith.constant 0 : index
    %c0_3 = arith.constant 0 : index
    %c0_4 = arith.constant 0 : index
    %2 = vector.load %arg2[%c0_2, %c0_3, %c0_4] : memref<1x64x8xf32, #tpu.memory_space<vmem>>, vector<1x64x8xf32>
    %3 = vector.shape_cast %2 : vector<1x64x8xf32> to vector<64x8xf32>
    %c0_5 = arith.constant 0 : index
    %c0_6 = arith.constant 0 : index
    %4 = vector.load %arg3[%c0_5, %c0_6] : memref<8x64xf32, #tpu.memory_space<vmem>>, vector<8x64xf32>
    %cst = arith.constant dense<0.000000e+00> : vector<8x64xf32>
    %5 = tpu.matmul %1, %4, %cst {dimension_numbers = #tpu.dot_dimension_numbers<[1], [0], [0], [1], [0, 0, 1, 1], [], []>} : vector<8x8xf32>, vector<8x64xf32>, vector<8x64xf32> -> vector<8x64xf32>
    %c0_7 = arith.constant 0 : index
    %c0_8 = arith.constant 0 : index
    %6 = vector.load %arg4[%c0_7, %c0_8] : memref<1x64xf32, #tpu.memory_space<vmem>>, vector<1x64xf32>
    %7 = vector.broadcast %6 : vector<1x64xf32> to vector<8x64xf32>
    %8 = arith.addf %5, %7 : vector<8x64xf32>
    %c0_9 = arith.constant 0 : index
    %c0_10 = arith.constant 0 : index
    %9 = vector.load %arg5[%c0_9, %c0_10] : memref<8x128xf32, #tpu.memory_space<vmem>>, vector<8x128xf32>
    %cst_11 = arith.constant dense<0.000000e+00> : vector<64x128xf32>
    %10 = tpu.matmul %3, %9, %cst_11 {dimension_numbers = #tpu.dot_dimension_numbers<[1], [0], [0], [1], [0, 0, 1, 1], [], []>} : vector<64x8xf32>, vector<8x128xf32>, vector<64x128xf32> -> vector<64x128xf32>
    %c0_12 = arith.constant 0 : index
    %c0_13 = arith.constant 0 : index
    %11 = vector.load %arg6[%c0_12, %c0_13] : memref<1x128xf32, #tpu.memory_space<vmem>>, vector<1x128xf32>
    %12 = vector.broadcast %11 : vector<1x128xf32> to vector<64x128xf32>
    %13 = arith.addf %10, %12 : vector<64x128xf32>
    %c0_14 = arith.constant 0 : index
    %c0_15 = arith.constant 0 : index
    %14 = vector.load %arg7[%c0_14, %c0_15] : memref<64x64xf32, #tpu.memory_space<vmem>>, vector<64x64xf32>
    %cst_16 = arith.constant 0.000000e+00 : f32
    %15 = vector.broadcast %cst_16 : f32 to vector<1x64xf32>
    %16 = vector.extract_strided_slice %8 {offsets = [0, 0], sizes = [8, 16], strides = [1, 1]} : vector<8x64xf32> to vector<8x16xf32>
    %17 = vector.extract_strided_slice %13 {offsets = [0, 0], sizes = [64, 16], strides = [1, 1]} : vector<64x128xf32> to vector<64x16xf32>
    %18 = vector.extract_strided_slice %13 {offsets = [0, 64], sizes = [64, 16], strides = [1, 1]} : vector<64x128xf32> to vector<64x16xf32>
    "tpu.trace_start"() <{level = 10 : i32, message = "md,nd->mn"}> : () -> ()
    %cst_17 = arith.constant dense<0.000000e+00> : vector<8x64xf32>
    %19 = tpu.matmul %16, %17, %cst_17 {dimension_numbers = #tpu.dot_dimension_numbers<[1], [1], [0], [0], [0, 0, 1, 0], [], []>} : vector<8x16xf32>, vector<64x16xf32>, vector<8x64xf32> -> vector<8x64xf32>
    "tpu.trace_stop"() : () -> ()
    %cst_18 = arith.constant dense<0xFF800000> : vector<8xf32>
    %20 = vector.multi_reduction <maximumf>, %19, %cst_18 [1] : vector<8x64xf32> to vector<8xf32>
    %21 = vector.shape_cast %20 : vector<8xf32> to vector<8x1xf32>
    %22 = vector.broadcast %21 : vector<8x1xf32> to vector<8x64xf32>
    %23 = arith.subf %19, %22 : vector<8x64xf32>
    %24 = math.exp %23 : vector<8x64xf32>
    %cst_19 = arith.constant dense<0.000000e+00> : vector<8xf32>
    %25 = vector.multi_reduction <add>, %24, %cst_19 [1] : vector<8x64xf32> to vector<8xf32>
    %26 = vector.shape_cast %25 : vector<8xf32> to vector<8x1xf32>
    %27 = tpu.reciprocal %26 : vector<8x1xf32> -> vector<8x1xf32>
    %28 = vector.broadcast %27 : vector<8x1xf32> to vector<8x64xf32>
    %29 = arith.mulf %24, %28 : vector<8x64xf32>
    %cst_20 = arith.constant dense<0.000000e+00> : vector<64xf32>
    %30 = vector.multi_reduction <add>, %29, %cst_20 [0] : vector<8x64xf32> to vector<64xf32>
    %31 = vector.shape_cast %30 : vector<64xf32> to vector<1x64xf32>
    %cst_21 = arith.constant 1.250000e-01 : f32
    %32 = vector.broadcast %cst_21 : f32 to vector<1x64xf32>
    %33 = arith.mulf %31, %32 : vector<1x64xf32>
    %cst_22 = arith.constant dense<0.000000e+00> : vector<1x16xf32>
    %34 = tpu.matmul %33, %18, %cst_22 {dimension_numbers = #tpu.dot_dimension_numbers<[1], [0], [0], [1], [0, 0, 1, 1], [], []>} : vector<1x64xf32>, vector<64x16xf32>, vector<1x16xf32> -> vector<1x16xf32>
    %35 = vector.extract_strided_slice %14 {offsets = [0, 0], sizes = [16, 64], strides = [1, 1]} : vector<64x64xf32> to vector<16x64xf32>
    %cst_23 = arith.constant dense<0.000000e+00> : vector<1x64xf32>
    %36 = tpu.matmul %34, %35, %cst_23 {dimension_numbers = #tpu.dot_dimension_numbers<[1], [0], [0], [1], [0, 0, 1, 1], [], []>} : vector<1x16xf32>, vector<16x64xf32>, vector<1x64xf32> -> vector<1x64xf32>
    %37 = arith.addf %15, %36 : vector<1x64xf32>
    %38 = vector.extract_strided_slice %8 {offsets = [0, 16], sizes = [8, 16], strides = [1, 1]} : vector<8x64xf32> to vector<8x16xf32>
    %39 = vector.extract_strided_slice %13 {offsets = [0, 16], sizes = [64, 16], strides = [1, 1]} : vector<64x128xf32> to vector<64x16xf32>
    %40 = vector.extract_strided_slice %13 {offsets = [0, 80], sizes = [64, 16], strides = [1, 1]} : vector<64x128xf32> to vector<64x16xf32>
    "tpu.trace_start"() <{level = 10 : i32, message = "md,nd->mn"}> : () -> ()
    %cst_24 = arith.constant dense<0.000000e+00> : vector<8x64xf32>
    %41 = tpu.matmul %38, %39, %cst_24 {dimension_numbers = #tpu.dot_dimension_numbers<[1], [1], [0], [0], [0, 0, 1, 0], [], []>} : vector<8x16xf32>, vector<64x16xf32>, vector<8x64xf32> -> vector<8x64xf32>
    "tpu.trace_stop"() : () -> ()
    %cst_25 = arith.constant dense<0xFF800000> : vector<8xf32>
    %42 = vector.multi_reduction <maximumf>, %41, %cst_25 [1] : vector<8x64xf32> to vector<8xf32>
    %43 = vector.shape_cast %42 : vector<8xf32> to vector<8x1xf32>
    %44 = vector.broadcast %43 : vector<8x1xf32> to vector<8x64xf32>
    %45 = arith.subf %41, %44 : vector<8x64xf32>
    %46 = math.exp %45 : vector<8x64xf32>
    %cst_26 = arith.constant dense<0.000000e+00> : vector<8xf32>
    %47 = vector.multi_reduction <add>, %46, %cst_26 [1] : vector<8x64xf32> to vector<8xf32>
    %48 = vector.shape_cast %47 : vector<8xf32> to vector<8x1xf32>
    %49 = tpu.reciprocal %48 : vector<8x1xf32> -> vector<8x1xf32>
    %50 = vector.broadcast %49 : vector<8x1xf32> to vector<8x64xf32>
    %51 = arith.mulf %46, %50 : vector<8x64xf32>
    %cst_27 = arith.constant dense<0.000000e+00> : vector<64xf32>
    %52 = vector.multi_reduction <add>, %51, %cst_27 [0] : vector<8x64xf32> to vector<64xf32>
    %53 = vector.shape_cast %52 : vector<64xf32> to vector<1x64xf32>
    %cst_28 = arith.constant 1.250000e-01 : f32
    %54 = vector.broadcast %cst_28 : f32 to vector<1x64xf32>
    %55 = arith.mulf %53, %54 : vector<1x64xf32>
    %cst_29 = arith.constant dense<0.000000e+00> : vector<1x16xf32>
    %56 = tpu.matmul %55, %40, %cst_29 {dimension_numbers = #tpu.dot_dimension_numbers<[1], [0], [0], [1], [0, 0, 1, 1], [], []>} : vector<1x64xf32>, vector<64x16xf32>, vector<1x16xf32> -> vector<1x16xf32>
    %57 = vector.extract_strided_slice %14 {offsets = [16, 0], sizes = [16, 64], strides = [1, 1]} : vector<64x64xf32> to vector<16x64xf32>
    %cst_30 = arith.constant dense<0.000000e+00> : vector<1x64xf32>
    %58 = tpu.matmul %56, %57, %cst_30 {dimension_numbers = #tpu.dot_dimension_numbers<[1], [0], [0], [1], [0, 0, 1, 1], [], []>} : vector<1x16xf32>, vector<16x64xf32>, vector<1x64xf32> -> vector<1x64xf32>
    %59 = arith.addf %37, %58 : vector<1x64xf32>
    %60 = vector.extract_strided_slice %8 {offsets = [0, 32], sizes = [8, 16], strides = [1, 1]} : vector<8x64xf32> to vector<8x16xf32>
    %61 = vector.extract_strided_slice %13 {offsets = [0, 32], sizes = [64, 16], strides = [1, 1]} : vector<64x128xf32> to vector<64x16xf32>
    %62 = vector.extract_strided_slice %13 {offsets = [0, 96], sizes = [64, 16], strides = [1, 1]} : vector<64x128xf32> to vector<64x16xf32>
    "tpu.trace_start"() <{level = 10 : i32, message = "md,nd->mn"}> : () -> ()
    %cst_31 = arith.constant dense<0.000000e+00> : vector<8x64xf32>
    %63 = tpu.matmul %60, %61, %cst_31 {dimension_numbers = #tpu.dot_dimension_numbers<[1], [1], [0], [0], [0, 0, 1, 0], [], []>} : vector<8x16xf32>, vector<64x16xf32>, vector<8x64xf32> -> vector<8x64xf32>
    "tpu.trace_stop"() : () -> ()
    %cst_32 = arith.constant dense<0xFF800000> : vector<8xf32>
    %64 = vector.multi_reduction <maximumf>, %63, %cst_32 [1] : vector<8x64xf32> to vector<8xf32>
    %65 = vector.shape_cast %64 : vector<8xf32> to vector<8x1xf32>
    %66 = vector.broadcast %65 : vector<8x1xf32> to vector<8x64xf32>
    %67 = arith.subf %63, %66 : vector<8x64xf32>
    %68 = math.exp %67 : vector<8x64xf32>
    %cst_33 = arith.constant dense<0.000000e+00> : vector<8xf32>
    %69 = vector.multi_reduction <add>, %68, %cst_33 [1] : vector<8x64xf32> to vector<8xf32>
    %70 = vector.shape_cast %69 : vector<8xf32> to vector<8x1xf32>
    %71 = tpu.reciprocal %70 : vector<8x1xf32> -> vector<8x1xf32>
    %72 = vector.broadcast %71 : vector<8x1xf32> to vector<8x64xf32>
    %73 = arith.mulf %68, %72 : vector<8x64xf32>
    %cst_34 = arith.constant dense<0.000000e+00> : vector<64xf32>
    %74 = vector.multi_reduction <add>, %73, %cst_34 [0] : vector<8x64xf32> to vector<64xf32>
    %75 = vector.shape_cast %74 : vector<64xf32> to vector<1x64xf32>
    %cst_35 = arith.constant 1.250000e-01 : f32
    %76 = vector.broadcast %cst_35 : f32 to vector<1x64xf32>
    %77 = arith.mulf %75, %76 : vector<1x64xf32>
    %cst_36 = arith.constant dense<0.000000e+00> : vector<1x16xf32>
    %78 = tpu.matmul %77, %62, %cst_36 {dimension_numbers = #tpu.dot_dimension_numbers<[1], [0], [0], [1], [0, 0, 1, 1], [], []>} : vector<1x64xf32>, vector<64x16xf32>, vector<1x16xf32> -> vector<1x16xf32>
    %79 = vector.extract_strided_slice %14 {offsets = [32, 0], sizes = [16, 64], strides = [1, 1]} : vector<64x64xf32> to vector<16x64xf32>
    %cst_37 = arith.constant dense<0.000000e+00> : vector<1x64xf32>
    %80 = tpu.matmul %78, %79, %cst_37 {dimension_numbers = #tpu.dot_dimension_numbers<[1], [0], [0], [1], [0, 0, 1, 1], [], []>} : vector<1x16xf32>, vector<16x64xf32>, vector<1x64xf32> -> vector<1x64xf32>
    %81 = arith.addf %59, %80 : vector<1x64xf32>
    %82 = vector.extract_strided_slice %8 {offsets = [0, 48], sizes = [8, 16], strides = [1, 1]} : vector<8x64xf32> to vector<8x16xf32>
    %83 = vector.extract_strided_slice %13 {offsets = [0, 48], sizes = [64, 16], strides = [1, 1]} : vector<64x128xf32> to vector<64x16xf32>
    %84 = vector.extract_strided_slice %13 {offsets = [0, 112], sizes = [64, 16], strides = [1, 1]} : vector<64x128xf32> to vector<64x16xf32>
    "tpu.trace_start"() <{level = 10 : i32, message = "md,nd->mn"}> : () -> ()
    %cst_38 = arith.constant dense<0.000000e+00> : vector<8x64xf32>
    %85 = tpu.matmul %82, %83, %cst_38 {dimension_numbers = #tpu.dot_dimension_numbers<[1], [1], [0], [0], [0, 0, 1, 0], [], []>} : vector<8x16xf32>, vector<64x16xf32>, vector<8x64xf32> -> vector<8x64xf32>
    "tpu.trace_stop"() : () -> ()
    %cst_39 = arith.constant dense<0xFF800000> : vector<8xf32>
    %86 = vector.multi_reduction <maximumf>, %85, %cst_39 [1] : vector<8x64xf32> to vector<8xf32>
    %87 = vector.shape_cast %86 : vector<8xf32> to vector<8x1xf32>
    %88 = vector.broadcast %87 : vector<8x1xf32> to vector<8x64xf32>
    %89 = arith.subf %85, %88 : vector<8x64xf32>
    %90 = math.exp %89 : vector<8x64xf32>
    %cst_40 = arith.constant dense<0.000000e+00> : vector<8xf32>
    %91 = vector.multi_reduction <add>, %90, %cst_40 [1] : vector<8x64xf32> to vector<8xf32>
    %92 = vector.shape_cast %91 : vector<8xf32> to vector<8x1xf32>
    %93 = tpu.reciprocal %92 : vector<8x1xf32> -> vector<8x1xf32>
    %94 = vector.broadcast %93 : vector<8x1xf32> to vector<8x64xf32>
    %95 = arith.mulf %90, %94 : vector<8x64xf32>
    %cst_41 = arith.constant dense<0.000000e+00> : vector<64xf32>
    %96 = vector.multi_reduction <add>, %95, %cst_41 [0] : vector<8x64xf32> to vector<64xf32>
    %97 = vector.shape_cast %96 : vector<64xf32> to vector<1x64xf32>
    %cst_42 = arith.constant 1.250000e-01 : f32
    %98 = vector.broadcast %cst_42 : f32 to vector<1x64xf32>
    %99 = arith.mulf %97, %98 : vector<1x64xf32>
    %cst_43 = arith.constant dense<0.000000e+00> : vector<1x16xf32>
    %100 = tpu.matmul %99, %84, %cst_43 {dimension_numbers = #tpu.dot_dimension_numbers<[1], [0], [0], [1], [0, 0, 1, 1], [], []>} : vector<1x64xf32>, vector<64x16xf32>, vector<1x16xf32> -> vector<1x16xf32>
    %101 = vector.extract_strided_slice %14 {offsets = [48, 0], sizes = [16, 64], strides = [1, 1]} : vector<64x64xf32> to vector<16x64xf32>
    %cst_44 = arith.constant dense<0.000000e+00> : vector<1x64xf32>
    %102 = tpu.matmul %100, %101, %cst_44 {dimension_numbers = #tpu.dot_dimension_numbers<[1], [0], [0], [1], [0, 0, 1, 1], [], []>} : vector<1x16xf32>, vector<16x64xf32>, vector<1x64xf32> -> vector<1x64xf32>
    %103 = arith.addf %81, %102 : vector<1x64xf32>
    %c0_45 = arith.constant 0 : index
    %c0_46 = arith.constant 0 : index
    %104 = vector.load %arg8[%c0_45, %c0_46] : memref<64x128xf32, #tpu.memory_space<vmem>>, vector<64x128xf32>
    %cst_47 = arith.constant dense<0.000000e+00> : vector<1x128xf32>
    %105 = tpu.matmul %103, %104, %cst_47 {dimension_numbers = #tpu.dot_dimension_numbers<[1], [0], [0], [1], [0, 0, 1, 1], [], []>} : vector<1x64xf32>, vector<64x128xf32>, vector<1x128xf32> -> vector<1x128xf32>
    %c0_48 = arith.constant 0 : index
    %c0_49 = arith.constant 0 : index
    %106 = vector.load %arg9[%c0_48, %c0_49] : memref<1x128xf32, #tpu.memory_space<vmem>>, vector<1x128xf32>
    %107 = arith.addf %105, %106 : vector<1x128xf32>
    %cst_50 = arith.constant 0.000000e+00 : f32
    %108 = vector.broadcast %cst_50 : f32 to vector<1x128xf32>
    %109 = arith.maximumf %107, %108 : vector<1x128xf32>
    %c0_51 = arith.constant 0 : index
    %c0_52 = arith.constant 0 : index
    %110 = vector.load %arg10[%c0_51, %c0_52] : memref<128x768xf32, #tpu.memory_space<vmem>>, vector<128x768xf32>
    %cst_53 = arith.constant dense<0.000000e+00> : vector<1x768xf32>
    %111 = tpu.matmul %109, %110, %cst_53 {dimension_numbers = #tpu.dot_dimension_numbers<[1], [0], [0], [1], [0, 0, 1, 1], [], []>} : vector<1x128xf32>, vector<128x768xf32>, vector<1x768xf32> -> vector<1x768xf32>
    %c0_54 = arith.constant 0 : index
    %c0_55 = arith.constant 0 : index
    %112 = vector.load %arg11[%c0_54, %c0_55] : memref<1x768xf32, #tpu.memory_space<vmem>>, vector<1x768xf32>
    %113 = arith.addf %111, %112 : vector<1x768xf32>
    %c0_56 = arith.constant 0 : index
    %c0_57 = arith.constant 0 : index
    %c0_58 = arith.constant 0 : index
    %114 = vector.load %arg12[%c0_56, %c0_57, %c0_58] : memref<1x1x768xf32, #tpu.memory_space<vmem>>, vector<1x1x768xf32>
    %115 = vector.shape_cast %114 : vector<1x1x768xf32> to vector<1x768xf32>
    %116 = vector.shape_cast %113 : vector<1x768xf32> to vector<1x1x768xf32>
    tpu.vector_store %arg12[%c0_56, %c0_57, %c0_58], %116 {strides = array<i32>} : memref<1x1x768xf32, #tpu.memory_space<vmem>>, vector<1x1x768xf32>,
    return
  }
  func.func @transform_0(%arg0: i32) -> (i32, i32, i32) {
    %c0_i32 = arith.constant 0 : i32
    %c0_i32_0 = arith.constant 0 : i32
    %c0_i32_1 = arith.constant 0 : i32
    return %arg0, %c0_i32, %c0_i32_0 : i32, i32, i32
  }
  func.func @transform_1(%arg0: i32) -> (i32, i32, i32) {
    %c0_i32 = arith.constant 0 : i32
    %c0_i32_0 = arith.constant 0 : i32
    %c0_i32_1 = arith.constant 0 : i32
    return %arg0, %c0_i32, %c0_i32_0 : i32, i32, i32
  }
  func.func @transform_2(%arg0: i32) -> (i32, i32) {
    %c0_i32 = arith.constant 0 : i32
    %c0_i32_0 = arith.constant 0 : i32
    %c0_i32_1 = arith.constant 0 : i32
    return %c0_i32, %c0_i32_0 : i32, i32
  }
  func.func @transform_3(%arg0: i32) -> (i32, i32) {
    %c0_i32 = arith.constant 0 : i32
    %c0_i32_0 = arith.constant 0 : i32
    %c0_i32_1 = arith.constant 0 : i32
    return %c0_i32, %c0_i32_0 : i32, i32
  }
  func.func @transform_4(%arg0: i32) -> (i32, i32) {
    %c0_i32 = arith.constant 0 : i32
    %c0_i32_0 = arith.constant 0 : i32
    %c0_i32_1 = arith.constant 0 : i32
    return %c0_i32, %c0_i32_0 : i32, i32
  }
  func.func @transform_5(%arg0: i32) -> (i32, i32) {
    %c0_i32 = arith.constant 0 : i32
    %c0_i32_0 = arith.constant 0 : i32
    %c0_i32_1 = arith.constant 0 : i32
    return %c0_i32, %c0_i32_0 : i32, i32
  }
  func.func @transform_6(%arg0: i32) -> (i32, i32) {
    %c0_i32 = arith.constant 0 : i32
    %c0_i32_0 = arith.constant 0 : i32
    %c0_i32_1 = arith.constant 0 : i32
    return %c0_i32, %c0_i32_0 : i32, i32
  }
  func.func @transform_7(%arg0: i32) -> (i32, i32) {
    %c0_i32 = arith.constant 0 : i32
    %c0_i32_0 = arith.constant 0 : i32
    %c0_i32_1 = arith.constant 0 : i32
    return %c0_i32, %c0_i32_0 : i32, i32
  }
  func.func @transform_8(%arg0: i32) -> (i32, i32) {
    %c0_i32 = arith.constant 0 : i32
    %c0_i32_0 = arith.constant 0 : i32
    %c0_i32_1 = arith.constant 0 : i32
    return %c0_i32, %c0_i32_0 : i32, i32
  }
  func.func @transform_9(%arg0: i32) -> (i32, i32) {
    %c0_i32 = arith.constant 0 : i32
    %c0_i32_0 = arith.constant 0 : i32
    %c0_i32_1 = arith.constant 0 : i32
    return %c0_i32, %c0_i32_0 : i32, i32
  }
  func.func @transform_10(%arg0: i32) -> (i32, i32) {
    %c0_i32 = arith.constant 0 : i32
    %c0_i32_0 = arith.constant 0 : i32
    %c0_i32_1 = arith.constant 0 : i32
    return %c0_i32, %c0_i32_0 : i32, i32
  }
  func.func @transform_11(%arg0: i32) -> (i32, i32, i32) {
    %c0_i32 = arith.constant 0 : i32
    %c0_i32_0 = arith.constant 0 : i32
    %c0_i32_1 = arith.constant 0 : i32
    return %arg0, %c0_i32, %c0_i32_0 : i32, i32, i32
  }
}

</mosaic_0001>

<bundles_post_ra>
// kernel: spatial_guidance_forward.1
= control target key start
LH: loop header
LB: loop body
LE: loop exit
PB: predicated region body
PF: predicated region fallthrough
CT: control target
= control target key end

     0   :  { %s3236_s17 = smov 0   ;;  %s3817_s0 = inlined_call_operand.vmem [shape: f32[2,8,8], index: 0, kind: input, shape index: {}]   ;;  %s3818_s1 = inlined_call_operand.vmem [shape: f32[2,64,8], index: 1, kind: input, shape index: {}]   ;;  %s3819_s2 = inlined_call_operand.vmem [shape: f32[8,64], index: 2, kind: input, shape index: {}]   ;;  %s3820_s3 = inlined_call_operand.vmem [shape: f32[1,64], index: 3, kind: input, shape index: {}]   ;;  %s3821_s4 = inlined_call_operand.vmem [shape: f32[8,128], index: 4, kind: input, shape index: {}]   ;;  %s3822_s5 = inlined_call_operand.vmem [shape: f32[1,128], index: 5, kind: input, shape index: {}]   ;;  %s3823_s6 = inlined_call_operand.vmem [shape: f32[64,64], index: 6, kind: input, shape index: {}]   ;;  %s3824_s7 = inlined_call_operand.vmem [shape: f32[64,128], index: 7, kind: input, shape index: {}]   ;;  %s3825_s8 = inlined_call_operand.vmem [shape: f32[1,128], index: 8, kind: input, shape index: {}]   ;;  %s3826_s9 = inlined_call_operand.vmem [shape: f32[128,768], index: 9, kind: input, shape index: {}]   ;;  %s3827_s10 = inlined_call_operand.vmem [shape: f32[1,768], index: 10, kind: input, shape index: {}]   ;;  %s3828_s11 = inlined_call_operand.vmem [shape: f32[2,1,768], index: 11, kind: output, shape index: {}]  }
   0x1 LB: > { %s2354_s18 = sadd.s32 4294967295, %s3163_s17   ;;  %p2358_p0 = scmp.ge.s32.totalorder %s3163_s17, 1  ;;  %s3163_s17 = sphi %s3236_s17, %s21_s17  }
   0x2   : > { %p346_p1 = scmp.lt.s32.totalorder %s3163_s17, 3 }
   0x4   : > { %p347_p2 = pnand %p2358_p0, %p346_p1 }
   0x5   : > { %v493_v0 = vld [vmem:[%s3821_s4] sm:$0xff] (!%p347_p2)  ;;  %p389_p3 = scmp.lt.s32.totalorder (!%p347_p2), %s2354_s18, 1  ;;  %v3165_v2 = vmov (!%p347_p2), 0.0   ;;  %vm3166_vm0 = vmmov (!%p347_p2), 0   ;;  %vm419_vm1 = vcmask (!%p347_p2), 64512   ;;  %v3167_v12 = vmov (!%p347_p2), 0.0|0.0  }
   0x6   : > { %350 = sbr.rel (%p347_p2) target bundleno = 3634 (0xe32), region = 64  ;;  %v411_v1 = vld [vmem:[%s3819_s2] sm:$0xff] (!%p347_p2)  ;;  %2530 = vmatprep.subr.mxu1 (!%p347_p2), %v493_v0  ;;  %2525 = vmatprep.subr.mxu0 (!%p347_p2), %v3165_v2  ;;  %vm638_vm2 = vcmask (!%p347_p2), 130048   ;;  %s3168_s14 = smov (!%p347_p2), 64   ;;  %vm736_vm4 = vcmask (!%p347_p2), 523264  }
   0x7   : > { %2531 = vmatpush3.msra.mxu1 (!%p347_p2), %v493_v0  ;;  %2526 = vmatpush3.msra.mxu0 (!%p347_p2), %v411_v1  ;;  %v2364_v13 = vld [vmem:[%s3822_s5] ss:$0 sm:$0xff] (!%p347_p2)  ;;  %vm3283_vm3 = vmpackc.low (!%p347_p2), %vm638_vm2, %vm638_vm2  ;;  %s3169_s15 = smov (!%p347_p2), 112   ;;  %s3170_s20 = smov (!%p347_p2), 48  }
   0x8   : > { %2527 = vmatprep.mubr.msk.f32.mxu0 (!%p347_p2), %vm3166_vm0, %v3165_v2  ;;  %2743 = vmatprep.subr.bf16.mxu0 (!%p347_p2), %v3167_v12  ;;  %v2362_v41 = vld [vmem:[%s3820_s3] ss:$0 sm:$0xff] (!%p347_p2)  ;;  %s3171_s21 = smov (!%p347_p2), 96   ;;  %s3173_s12 = smov (!%p347_p2), 80  }
   0x9   : > { %2759 = vmatprep.subr.bf16.mxu1 (!%p347_p2), %v3167_v12  ;;  %s3174_s19 = smov (!%p347_p2), 16  }
   0xd   : > { %s3832_s18 = smov (!%p389_p3, %s2354_s18), 1 }
   0xe   : > { %s2420_s23 = sshll.u32 %s3832_s18, 6  ;;  %s2359_s24 = sshll.u32 %s3832_s18, 3 }
   0xf   : > { %s397_s27 = scalar_lea.vmem %s3818_s1, %s2420_s23  ;;  %s392_s30 = scalar_lea.vmem %s3817_s0, %s2359_s24 }
  0x10   : > { %v403_v3 = vld [vmem:[%s397_s27] sm:$0xff]  ;;  %v404_v4 = vld [vmem:[%s397_s27 + $0x8] sm:$0xff]  ;;  %v405_v5 = vld [vmem:[%s397_s27 + $0x10] sm:$0xff]  ;;  %s2981_s13 = smul.u32 6, %s3832_s18 }
  0x11   : > { %2532 = vmatprep.mubr.msk.f32.mxu1 %vm419_vm1, %v403_v3  ;;  %v402_v6 = vld [vmem:[%s392_s30] sm:$0xff]  ;;  %v406_v7 = vld [vmem:[%s397_s27 + $0x18] sm:$0xff]  ;;  %v408_v9 = vld [vmem:[%s397_s27 + $0x28] sm:$0xff]  ;;  %s3172_s30 = smov 32  }
  0x12   : > { %2533 = vmatmul.mubr.msk.f32.vlgmr.msra.gmra.mrb[0].mxu1 %vm419_vm1, %v404_v4  ;;  %2528 = vmatmul.mubr.msk.f32.vlgmr.msra.gmra.mrb[0].mxu0 %vm419_vm1, %v402_v6  ;;  %v407_v8 = vld [vmem:[%s397_s27 + $0x20] sm:$0xff]  ;;  %v409_v10 = vld [vmem:[%s397_s27 + $0x30] sm:$0xff]  ;;  %v410_v11 = vld [vmem:[%s397_s27 + $0x38] sm:$0xff]  ;;  %s401_s16 = scalar_lea.vmem %s3828_s11, %s2981_s13 }
  0x13   : > { %2535 = vmatprep.mubr.msk.f32.mxu1 %vm419_vm1, %v405_v5  ;;  %2560 = vmatprep.mubr.msk.f32.mxu0 %vm3166_vm0, %v3165_v2 }
  0x16   : > { %2536 = vmatmul.mubr.msk.f32.gmra.mrb[2].mxu1 %vm419_vm1, %v406_v7 }
  0x17   : > { %2538 = vmatprep.mubr.msk.f32.mxu1 %vm419_vm1, %v407_v8 }
  0x1a   : > { %2539 = vmatmul.mubr.msk.f32.gmra.mrb[4].mxu1 %vm419_vm1, %v408_v9 }
  0x1b   : > { %2541 = vmatprep.mubr.msk.f32.mxu1 %vm419_vm1, %v409_v10 }
  0x1e   : > { %2542 = vmatmul.mubr.msk.f32.gmra.mrb[6].mxu1 %vm419_vm1, %v410_v11 }
  0x1f   : > { %2579 = vmatprep.mubr.msk.f32.mxu1 %vm3166_vm0, %v3165_v2 }
  0xe5   : > { %v2534_v14 = vpop.f32.mrb[0].mxu1  ;;  %v489_v17 = vpop.f32.mrb[0].mxu0 }
  0xe6   : > { %v597_v15 = vadd.f32 %v2534_v14, %v2364_v13  ;;  %v591_v16 = vpop.f32.mrb[1].mxu1  ;;  %v2529_v19 = vpop.f32.mrb[1].mxu0  ;;  %v3319_v42 = vadd.f32 %v2362_v41, %v489_v17 }
  0xe7   : > { %v592_v18 = vadd.f32 %v2364_v13, %v591_v16 }
  0xe9   : > { %v3287_v21 = vpack.i.bf16 %v597_v15, %v592_v18  ;;  %v2744_v22 = vpack.c.bf16 %v597_v15, %v592_v18  ;;  %v2537_v23 = vpop.f32.mrb[2].mxu1 }
  0xea   : > { %v607_v24 = vadd.f32 %v2537_v23, %v2364_v13  ;;  %v601_v25 = vpop.f32.mrb[3].mxu1 }
  0xeb   : > { %3002 = vrot.lane.b32.xlu1 %v3287_v21, %s3168_s14  ;;  %2746 = vmatpush3.bf16.xpose.msk.msra.mxu0 %vm3283_vm3, %v2744_v22  ;;  %v602_v26 = vadd.f32 %v2364_v13, %v601_v25 }
  0xec   : > { %2747 = vmatprep.subr.bf16.mxu0 %v3167_v12 }
  0xed   : > { %v2540_v27 = vpop.f32.mrb[4].mxu1  ;;  %v3294_v28 = vpack.i.bf16 %v607_v24, %v602_v26  ;;  %v2748_v29 = vpack.c.bf16 %v607_v24, %v602_v26 }
  0xee   : > { %v617_v30 = vadd.f32 %v2540_v27, %v2364_v13  ;;  %v611_v31 = vpop.f32.mrb[5].mxu1 }
  0xef   : > { %v612_v32 = vadd.f32 %v2364_v13, %v611_v31  ;;  %3007 = vrot.lane.b32.xlu1 %v3294_v28, %s3168_s14 }
  0xf1   : > { %v2543_v33 = vpop.f32.mrb[6].mxu1  ;;  %v2752_v34 = vpack.c.bf16 %v617_v30, %v612_v32  ;;  %v3298_v35 = vpack.i.bf16 %v617_v30, %v612_v32 }
  0xf2   : > { %v627_v36 = vadd.f32 %v2543_v33, %v2364_v13  ;;  %v621_v37 = vpop.f32.mrb[7].mxu1 }
  0xf3   : > { %v622_v38 = vadd.f32 %v2364_v13, %v621_v37  ;;  %2750 = vmatpush3.bf16.xpose.msk.msra.mxu0 %vm3283_vm3, %v2748_v29 }
  0xf4   : > { %2751 = vmatprep.subr.bf16.mxu0 %v3167_v12 }
  0xf5   : > { %v3303_v39 = vpack.i.bf16 %v627_v36, %v622_v38  ;;  %v2756_v40 = vpack.c.bf16 %v627_v36, %v622_v38 }
  0xf7   : > { %3017 = vrot.lane.b32.xlu1 %v3303_v39, %s3168_s14 }
  0xfb   : > { %3022 = vrot.lane.b32.xlu1 %v3287_v21, %s3169_s15  ;;  %2754 = vmatpush3.bf16.xpose.msk.msra.mxu0 %vm3283_vm3, %v2752_v34 }
  0xfc   : > { %2755 = vmatprep.subr.bf16.mxu0 %v3167_v12 }
  0xff   : > { %3027 = vrot.lane.b32.xlu1 %v3294_v28, %s3169_s15 }
 0x103   : > { %3032 = vrot.lane.b32.xlu1 %v3298_v35, %s3169_s15  ;;  %2758 = vmatpush3.bf16.xpose.msk.msra.mxu0 %vm3283_vm3, %v2756_v40 }
 0x104   : > { %2799 = vmatprep.subr.bf16.mxu0 %v3167_v12 }
 0x107   : > { %3037 = vrot.lane.b32.xlu1 %v3303_v39, %s3169_s15 }
 0x10a   : > { %2561 = vmatmul.mubr.msk.f32.vlgmr.msra.gmra.mrb[2].mxu0 %vm638_vm2, %v3319_v42 }
 0x10b   : > { %853 = vrot.lane.b32.xlu1 %v3319_v42, %s3169_s15  ;;  %2624 = vmatprep.mubr.msk.f32.mxu0 %vm3166_vm0, %v3165_v2 }
 0x10f   : > { %3047 = vrot.lane.b32.xlu1 %v3294_v28, %s3170_s20 }
 0x15d   : > { %v3003_v43 = vpop.permute.xlu1 %3002 }
 0x15e   : > { %v3005_v44 = vunpack.i.h.bf16 %v3003_v43  ;;  %v3004_v45 = vunpack.i.l.bf16 %v3003_v43 }
 0x160   : > { %v2760_v46 = vpack.c.bf16 %v3005_v44, %v3004_v45 }
 0x161   : > { %v3008_v47 = vpop.permute.xlu1 %3007 }
 0x162   : > { %2761 = vmatpush3.bf16.msra.mxu1 %v2760_v46  ;;  %v3010_v48 = vunpack.i.h.bf16 %v3008_v47  ;;  %v3009_v49 = vunpack.i.l.bf16 %v3008_v47 }
 0x163   : > { %2762 = vmatprep.subr.bf16.mxu1 %v3167_v12 }
 0x164   : > { %v2763_v50 = vpack.c.bf16 %v3010_v48, %v3009_v49 }
 0x166   : > { %2764 = vmatpush3.bf16.msra.mxu1 %v2763_v50 }
 0x167   : > { %2765 = vmatprep.subr.bf16.mxu1 %v3167_v12 }
 0x169   : > { %v3018_v63 = vpop.permute.xlu1 %3017 }
 0x16a   : > { %v3020_v0 = vunpack.i.h.bf16 %v3018_v63  ;;  %v3019_v1 = vunpack.i.l.bf16 %v3018_v63 }
 0x16c   : > { %v2769_v5 = vpack.c.bf16 %v3020_v0, %v3019_v1 }
 0x16d   : > { %v3023_v11 = vpop.permute.xlu1 %3022 }
 0x16e   : > { %v3025_v15 = vunpack.i.h.bf16 %v3023_v11  ;;  %v3024_v16 = vunpack.i.l.bf16 %v3023_v11 }
 0x170   : > { %v2772_v19 = vpack.c.bf16 %v3025_v15, %v3024_v16 }
 0x171   : > { %v3028_v22 = vpop.permute.xlu1 %3027 }
 0x172   : > { %v3030_v23 = vunpack.i.h.bf16 %v3028_v22  ;;  %v3029_v24 = vunpack.i.l.bf16 %v3028_v22 }
 0x174   : > { %v2776_v25 = vpack.c.bf16 %v3030_v23, %v3029_v24 }
 0x175   : > { %v3033_v26 = vpop.permute.xlu1 %3032 }
 0x176   : > { %v3035_v27 = vunpack.i.h.bf16 %v3033_v26  ;;  %v3034_v29 = vunpack.i.l.bf16 %v3033_v26 }
 0x178   : > { %v2780_v30 = vpack.c.bf16 %v3035_v27, %v3034_v29 }
 0x179   : > { %v3038_v31 = vpop.permute.xlu1 %3037 }
 0x17a   : > { %v3040_v32 = vunpack.i.h.bf16 %v3038_v31  ;;  %v3039_v33 = vunpack.i.l.bf16 %v3038_v31 }
 0x17c   : > { %v2784_v34 = vpack.c.bf16 %v3040_v32, %v3039_v33 }
 0x17d   : > { %v854_v36 = vpop.permute.xlu1 %853 }
 0x181   : > { %v3048_v47 = vpop.permute.xlu1 %3047 }
 0x1dd   : > { %v732_v51 = vpop.f32.mrb[2].mxu0 }
 0x1de   : > { %v2562_v52 = vpop.f32.mrb[3].mxu0  ;;  %v737_v53 = vsel %vm736_vm4, %v732_v51, -inf }
 0x1df   : > { %738 = vmax.xlane.f32.xlu0 %v737_v53  ;;  %v3049_v52 = vunpack.i.l.bf16 %v3048_v47 }
 0x26c   : > { %v739_v54 = vpop.xlane.xlu0 %738 }
 0x26d   : > { %v740_v55 = vsub.f32 %v732_v51, %v739_v54  ;;  %v3050_v51 = vunpack.i.h.bf16 %v3048_v47 }
 0x26f   : > { %v741_v56 = vmul.f32 1.442695, %v740_v55  ;;  %v2791_v55 = vpack.c.bf16 %v3050_v51, %v3049_v52 }
 0x271   : > { %3141 = vpow2.f32 %v741_v56 }
 0x27b   : > { %v3142_v57 = vpop.eup %3141 }
 0x27c   : > { %v743_v58 = vsel %vm736_vm4, %v3142_v57, 0.0 }
 0x27d   : > { %744 = vadd.xlane.f32.xlu0 %v743_v58 }
 0x293   : > { %3012 = vrot.lane.b32.xlu0 %v3298_v35, %s3168_s14 }
 0x30a   : > { %v745_v59 = vpop.xlane.xlu0 %744 }
 0x30b   : > { %3143 = vrcp.f32 %v745_v59 }
 0x30e   : > { %v3013_v60 = vpop.permute.xlu0 %3012 }
 0x30f   : > { %v3015_v61 = vunpack.i.h.bf16 %v3013_v60  ;;  %v3014_v62 = vunpack.i.l.bf16 %v3013_v60 }
 0x311   : > { %v2766_v3 = vpack.c.bf16 %v3015_v61, %v3014_v62  ;;  %v632_v61 = vld [vmem:[%s3823_s6 + $0x10] sm:$0xff]  ;;  %v633_v62 = vld [vmem:[%s3823_s6 + $0x18] sm:$0xff] }
 0x312   : > { %v2800_v63 = vpack.c.bf16 %v633_v62, %v632_v61 }
 0x313   : > { %2767 = vmatpush3.bf16.msra.mxu1 %v2766_v3 }
 0x314   : > { %2768 = vmatprep.subr.bf16.mxu1 %v3167_v12  ;;  %2801 = vmatpush3.bf16.msra.mxu0 %v2800_v63 }
 0x315   : > { %v3144_v4 = vpop.eup %3143  ;;  %2802 = vmatprep.subr.bf16.mxu0 %v3167_v12 }
 0x316   : > { %v747_v6 = vmul.f32 %v3144_v4, %v3142_v57 }
 0x317   : > { %2770 = vmatpush3.bf16.msra.mxu1 %v2769_v5 }
 0x318   : > { %v748_v7 = vsel %vm736_vm4, %v747_v6, 0.0  ;;  %2771 = vmatprep.subr.bf16.mxu1 %v3167_v12 }
 0x319   : > { %v749_v8 = vrot.slane %v748_v7, 4 }
 0x31b   : > { %v750_v9 = vadd.f32 %v749_v8, %v748_v7 }
 0x31d   : > { %v751_v10 = vrot.slane %v750_v9, 2 }
 0x31f   : > { %v752_v13 = vadd.f32 %v751_v10, %v750_v9 }
 0x321   : > { %v753_v14 = vrot.slane %v752_v13, 1 }
 0x323   : > { %v754_v17 = vadd.f32 %v753_v14, %v752_v13 }
 0x325   : > { %v755_v18 = vmul.f32 0.125, %v754_v17 }
 0x327   : > { %2580 = vmatmul.mubr.msk.f32.vlgmr.msra.gmra.mrb[8].mxu1 %vm736_vm4, %v755_v18 }
 0x328   : > { %2774 = vmatpush3.bf16.xpose.msk.msra.mxu1 %vm3283_vm3, %v2772_v19  ;;  %2598 = vmatprep.mubr.msk.f32.mxu1 %vm3166_vm0, %v3165_v2 }
 0x329   : > { %2775 = vmatprep.subr.bf16.mxu1 %v3167_v12 }
 0x330   : > { %2778 = vmatpush3.bf16.xpose.msk.msra.mxu1 %vm3283_vm3, %v2776_v25 }
 0x331   : > { %2779 = vmatprep.subr.bf16.mxu1 %v3167_v12 }
 0x338   : > { %2782 = vmatpush3.bf16.xpose.msk.msra.mxu1 %vm3283_vm3, %v2780_v30 }
 0x339   : > { %2783 = vmatprep.subr.bf16.mxu1 %v3167_v12 }
 0x340   : > { %2786 = vmatpush3.bf16.xpose.msk.msra.mxu1 %vm3283_vm3, %v2784_v34 }
 0x341   : > { %2787 = vmatprep.subr.bf16.mxu1 %v3167_v12 }
 0x347   : > { %2599 = vmatmul.mubr.msk.f32.vlgmr.msra.gmra.mrb[10].mxu1 %vm638_vm2, %v854_v36 }
 0x348   : > { %2617 = vmatprep.mubr.msk.f32.mxu1 %vm3166_vm0, %v3165_v2 }
 0x3fa   : > { %v3356_v37 = vpop.f32.mrb[8].mxu1 }
 0x3fb   : > { %v2581_v38 = vpop.f32.mrb[9].mxu1 }
 0x41a   : > { %v955_v40 = vpop.f32.mrb[10].mxu1 }
 0x41b   : > { %v2600_v41 = vpop.f32.mrb[11].mxu1  ;;  %v959_v43 = vsel %vm736_vm4, %v955_v40, -inf }
 0x41c   : > { %960 = vmax.xlane.f32.xlu0 %v959_v43  ;;  %v631_v41 = vld [vmem:[%s3823_s6 + $0x8] sm:$0xff] }
 0x432   : > { %3042 = vrot.lane.b32.xlu0 %v3287_v21, %s3170_s20 }
 0x436   : > { %3052 = vrot.lane.b32.xlu0 %v3298_v35, %s3170_s20 }
 0x43a   : > { %3062 = vrot.lane.b32.xlu0 %v3287_v21, %s3171_s21 }
 0x43e   : > { %3072 = vrot.lane.b32.xlu0 %v3298_v35, %s3171_s21 }
 0x442   : > { %1221 = vrot.lane.b32.xlu0 %v3319_v42, %s3171_s21 }
 0x4a9   : > { %v961_v44 = vpop.xlane.xlu0 %960 }
 0x4aa   : > { %v962_v45 = vsub.f32 %v955_v40, %v961_v44  ;;  %v630_v40 = vld [vmem:[%s3823_s6] sm:$0xff] }
 0x4ab   : > { %v2803_v43 = vpack.c.bf16 %v631_v41, %v630_v40 }
 0x4ac   : > { %v963_v46 = vmul.f32 1.442695, %v962_v45 }
 0x4ad   : > { %v3043_v48 = vpop.permute.xlu0 %3042 }
 0x4ae   : > { %3145 = vpow2.f32 %v963_v46  ;;  %v3045_v49 = vunpack.i.h.bf16 %v3043_v48  ;;  %v3044_v50 = vunpack.i.l.bf16 %v3043_v48 }
 0x4b0   : > { %v2788_v53 = vpack.c.bf16 %v3045_v49, %v3044_v50 }
 0x4b1   : > { %v3053_v54 = vpop.permute.xlu0 %3052 }
 0x4b2   : > { %2789 = vmatpush3.bf16.msra.mxu1 %v2788_v53  ;;  %v3055_v56 = vunpack.i.h.bf16 %v3053_v54  ;;  %v3054_v57 = vunpack.i.l.bf16 %v3053_v54 }
 0x4b3   : > { %2790 = vmatprep.subr.bf16.mxu1 %v3167_v12 }
 0x4b4   : > { %v2794_v59 = vpack.c.bf16 %v3055_v56, %v3054_v57 }
 0x4b5   : > { %v3063_v13 = vpop.permute.xlu0 %3062 }
 0x4b6   : > { %2792 = vmatpush3.bf16.msra.mxu1 %v2791_v55  ;;  %v3065_v16 = vunpack.i.h.bf16 %v3063_v13  ;;  %v3064_v17 = vunpack.i.l.bf16 %v3063_v13 }
 0x4b7   : > { %2793 = vmatprep.subr.bf16.mxu1 %v3167_v12 }
 0x4b8   : > { %v3146_v58 = vpop.eup %3145  ;;  %v2806_v22 = vpack.c.bf16 %v3065_v16, %v3064_v17  ;;  %v635_v16 = vld [vmem:[%s3823_s6 + $0x28] sm:$0xff] }
 0x4b9   : > { %v965_v60 = vsel %vm736_vm4, %v3146_v58, 0.0  ;;  %v3073_v27 = vpop.permute.xlu0 %3072 }
 0x4ba   : > { %966 = vadd.xlane.f32.xlu1 %v965_v60  ;;  %2795 = vmatpush3.bf16.msra.mxu1 %v2794_v59  ;;  %v3075_v29 = vunpack.i.h.bf16 %v3073_v27  ;;  %v3074_v30 = vunpack.i.l.bf16 %v3073_v27 }
 0x4bb   : > { %2796 = vmatprep.subr.bf16.mxu1 %v3167_v12 }
 0x4bc   : > { %v2814_v31 = vpack.c.bf16 %v3075_v29, %v3074_v30 }
 0x4bd   : > { %v1222_v38 = vpop.permute.xlu0 %1221 }
 0x4cb   : > { %3057 = vrot.lane.b32.xlu1 %v3303_v39, %s3170_s20 }
 0x4cf   : > { %3067 = vrot.lane.b32.xlu1 %v3294_v28, %s3171_s21 }
 0x4d3   : > { %3077 = vrot.lane.b32.xlu1 %v3303_v39, %s3171_s21 }
 0x547   : > { %v967_v0 = vpop.xlane.xlu1 %966 }
 0x548   : > { %3147 = vrcp.f32 %v967_v0 }
 0x54b   : > { %v3058_v1 = vpop.permute.xlu1 %3057 }
 0x54c   : > { %v3060_v3 = vunpack.i.h.bf16 %v3058_v1  ;;  %v3059_v4 = vunpack.i.l.bf16 %v3058_v1 }
 0x54e   : > { %v2797_v5 = vpack.c.bf16 %v3060_v3, %v3059_v4 }
 0x54f   : > { %v3068_v23 = vpop.permute.xlu1 %3067 }
 0x550   : > { %2798 = vmatpush3.bf16.msra.mxu1 %v2797_v5  ;;  %v3070_v24 = vunpack.i.h.bf16 %v3068_v23  ;;  %v3069_v25 = vunpack.i.l.bf16 %v3068_v23 }
 0x551   : > { %2805 = vmatprep.subr.bf16.mxu1 %v3167_v12 }
 0x552   : > { %v3148_v6 = vpop.eup %3147  ;;  %v2810_v26 = vpack.c.bf16 %v3070_v24, %v3069_v25 }
 0x553   : > { %v969_v7 = vmul.f32 %v3148_v6, %v3146_v58  ;;  %v3078_v32 = vpop.permute.xlu1 %3077 }
 0x554   : > { %v3080_v33 = vunpack.i.h.bf16 %v3078_v32  ;;  %v3079_v34 = vunpack.i.l.bf16 %v3078_v32 }
 0x555   : > { %v970_v8 = vsel %vm736_vm4, %v969_v7, 0.0 }
 0x556   : > { %v971_v9 = vrot.slane %v970_v8, 4  ;;  %v2818_v36 = vpack.c.bf16 %v3080_v33, %v3079_v34 }
 0x558   : > { %v972_v10 = vadd.f32 %v971_v9, %v970_v8 }
 0x55a   : > { %v973_v11 = vrot.slane %v972_v10, 2 }
 0x55c   : > { %v974_v14 = vadd.f32 %v973_v11, %v972_v10 }
 0x55e   : > { %v975_v15 = vrot.slane %v974_v14, 1 }
 0x560   : > { %v976_v18 = vadd.f32 %v975_v15, %v974_v14  ;;  %v634_v15 = vld [vmem:[%s3823_s6 + $0x20] sm:$0xff] }
 0x562   : > { %v977_v19 = vmul.f32 0.125, %v976_v18  ;;  %v2834_v18 = vpack.c.bf16 %v635_v16, %v634_v15  ;;  %v1813_v15 = vld [vmem:[%s3824_s7] sm:$0xff]  ;;  %v1814_v16 = vld [vmem:[%s3824_s7 + $0x8] sm:$0xff] }
 0x564   : > { %2618 = vmatmul.mubr.msk.f32.vlgmr.msra.gmra.mrb[12].mxu1 %vm736_vm4, %v977_v19 }
 0x565   : > { %2808 = vmatpush3.bf16.xpose.msk.msra.mxu1 %vm3283_vm3, %v2806_v22  ;;  %2650 = vmatprep.mubr.msk.f32.mxu1 %vm3166_vm0, %v3165_v2 }
 0x566   : > { %2809 = vmatprep.subr.bf16.mxu1 %v3167_v12 }
 0x56d   : > { %2812 = vmatpush3.bf16.xpose.msk.msra.mxu1 %vm3283_vm3, %v2810_v26 }
 0x56e   : > { %2813 = vmatprep.subr.bf16.mxu1 %v3167_v12 }
 0x575   : > { %2816 = vmatpush3.bf16.xpose.msk.msra.mxu1 %vm3283_vm3, %v2814_v31 }
 0x576   : > { %2817 = vmatprep.subr.bf16.mxu1 %v3167_v12 }
 0x57d   : > { %2820 = vmatpush3.bf16.xpose.msk.msra.mxu1 %vm3283_vm3, %v2818_v36 }
 0x57e   : > { %2852 = vmatprep.subr.bf16.mxu1 %v3167_v12 }
 0x584   : > { %2651 = vmatmul.mubr.msk.f32.vlgmr.msra.gmra.mrb[14].mxu1 %vm638_vm2, %v1222_v38 }
 0x585   : > { %2714 = vmatprep.mubr.msk.f32.mxu1 %vm3166_vm0, %v3165_v2 }
 0x637   : > { %v1071_v44 = vpop.f32.mrb[12].mxu1 }
 0x638   : > { %v2619_v45 = vpop.f32.mrb[13].mxu1  ;;  %2625 = vmatmul.mubr.msk.f32.vlgmr.msra.gmra.mrb[4].mxu0 %vm638_vm2, %v1071_v44 }
 0x639   : > { %2804 = vmatpush3.bf16.msra.mxu0 %v2803_v43  ;;  %2631 = vmatprep.mubr.msk.f32.mxu0 %vm3166_vm0, %v3165_v2 }
 0x63a   : > { %2821 = vmatprep.subr.bf16.mxu0 %v3167_v12 }
 0x640   : > { %2632 = vmatmul.mubr.msk.f32.vlgmr.msra.gmra.mrb[4].mxu0 %vm638_vm2, %v3356_v37 }
 0x641   : > { %2669 = vmatprep.mubr.msk.f32.mxu0 %vm3166_vm0, %v3165_v2 }
 0x657   : > { %v1323_v46 = vpop.f32.mrb[14].mxu1 }
 0x658   : > { %v2652_v47 = vpop.f32.mrb[15].mxu1  ;;  %v1327_v48 = vsel %vm736_vm4, %v1323_v46, -inf }
 0x659   : > { %1328 = vmax.xlane.f32.xlu1 %v1327_v48 }
 0x66a   : > { %3087 = vrot.lane.b32.xlu1 %v3294_v28, %s3172_s30 }
 0x66e   : > { %3092 = vrot.lane.b32.xlu1 %v3298_v35, %s3172_s30 }
 0x672   : > { %3102 = vrot.lane.b32.xlu1 %v3287_v21, %s3173_s12 }
 0x676   : > { %3112 = vrot.lane.b32.xlu1 %v3298_v35, %s3173_s12 }
 0x67a   : > { %1517 = vrot.lane.b32.xlu1 %v3319_v42, %s3173_s12 }
 0x6e6   : > { %v1329_v37 = vpop.xlane.xlu1 %1328 }
 0x6e7   : > { %v1330_v49 = vsub.f32 %v1323_v46, %v1329_v37 }
 0x6e9   : > { %v1331_v50 = vmul.f32 1.442695, %v1330_v49 }
 0x6ea   : > { %v3088_v54 = vpop.permute.xlu1 %3087 }
 0x6eb   : > { %3149 = vpow2.f32 %v1331_v50  ;;  %v3090_v57 = vunpack.i.h.bf16 %v3088_v54  ;;  %v3089_v58 = vunpack.i.l.bf16 %v3088_v54 }
 0x6ed   : > { %v2825_v62 = vpack.c.bf16 %v3090_v57, %v3089_v58 }
 0x6ee   : > { %v3093_v60 = vpop.permute.xlu1 %3092 }
 0x6ef   : > { %v3095_v63 = vunpack.i.h.bf16 %v3093_v60  ;;  %v3094_v0 = vunpack.i.l.bf16 %v3093_v60 }
 0x6f1   : > { %v2828_v5 = vpack.c.bf16 %v3095_v63, %v3094_v0 }
 0x6f2   : > { %v3103_v22 = vpop.permute.xlu1 %3102 }
 0x6f3   : > { %v3105_v23 = vunpack.i.h.bf16 %v3103_v22  ;;  %v3104_v24 = vunpack.i.l.bf16 %v3103_v22 }
 0x6f5   : > { %v3150_v51 = vpop.eup %3149  ;;  %v2837_v25 = vpack.c.bf16 %v3105_v23, %v3104_v24  ;;  %v1817_v23 = vld [vmem:[%s3824_s7 + $0x20] sm:$0xff]  ;;  %v1818_v24 = vld [vmem:[%s3824_s7 + $0x28] sm:$0xff] }
 0x6f6   : > { %v1333_v52 = vsel %vm736_vm4, %v3150_v51, 0.0  ;;  %v3113_v33 = vpop.permute.xlu1 %3112 }
 0x6f7   : > { %1334 = vadd.xlane.f32.xlu0 %v1333_v52  ;;  %v3115_v34 = vunpack.i.h.bf16 %v3113_v33  ;;  %v3114_v36 = vunpack.i.l.bf16 %v3113_v33  ;;  %v1903_v33 = vld [vmem:[%s3826_s9 + $0x38] sm:$0xff] }
 0x6f9   : > { %v2845_v38 = vpack.c.bf16 %v3115_v34, %v3114_v36  ;;  %v1896_v34 = vld [vmem:[%s3826_s9] sm:$0xff]  ;;  %v1902_v36 = vld [vmem:[%s3826_s9 + $0x30] sm:$0xff] }
 0x6fa   : > { %v1518_v45 = vpop.permute.xlu1 %1517 }
 0x70d   : > { %3082 = vrot.lane.b32.xlu0 %v3287_v21, %s3172_s30 }
 0x711   : > { %3097 = vrot.lane.b32.xlu0 %v3303_v39, %s3172_s30 }
 0x715   : > { %3107 = vrot.lane.b32.xlu0 %v3294_v28, %s3173_s12 }
 0x719   : > { %3117 = vrot.lane.b32.xlu0 %v3303_v39, %s3173_s12 }
 0x784   : > { %v1335_v53 = vpop.xlane.xlu0 %1334 }
 0x785   : > { %3151 = vrcp.f32 %v1335_v53 }
 0x788   : > { %v3083_v42 = vpop.permute.xlu0 %3082 }
 0x789   : > { %v3085_v55 = vunpack.i.h.bf16 %v3083_v42  ;;  %v3084_v56 = vunpack.i.l.bf16 %v3083_v42 }
 0x78b   : > { %v2822_v59 = vpack.c.bf16 %v3085_v55, %v3084_v56 }
 0x78c   : > { %v3098_v3 = vpop.permute.xlu0 %3097 }
 0x78d   : > { %2823 = vmatpush3.bf16.msra.mxu0 %v2822_v59  ;;  %v3100_v7 = vunpack.i.h.bf16 %v3098_v3  ;;  %v3099_v8 = vunpack.i.l.bf16 %v3098_v3 }
 0x78e   : > { %2824 = vmatprep.subr.bf16.mxu0 %v3167_v12 }
 0x78f   : > { %v3152_v61 = vpop.eup %3151  ;;  %v2831_v10 = vpack.c.bf16 %v3100_v7, %v3099_v8 }
 0x790   : > { %v1337_v1 = vmul.f32 %v3152_v61, %v3150_v51  ;;  %v3108_v27 = vpop.permute.xlu0 %3107 }
 0x791   : > { %2826 = vmatpush3.bf16.msra.mxu0 %v2825_v62  ;;  %v3110_v30 = vunpack.i.h.bf16 %v3108_v27  ;;  %v3109_v31 = vunpack.i.l.bf16 %v3108_v27  ;;  %v1820_v27 = vld [vmem:[%s3824_s7 + $0x38] sm:$0xff] }
 0x792   : > { %v1338_v4 = vsel %vm736_vm4, %v1337_v1, 0.0  ;;  %2827 = vmatprep.subr.bf16.mxu0 %v3167_v12 }
 0x793   : > { %v1339_v6 = vrot.slane %v1338_v4, 4  ;;  %v2841_v32 = vpack.c.bf16 %v3110_v30, %v3109_v31 }
 0x794   : > { %v3118_v40 = vpop.permute.xlu0 %3117 }
 0x795   : > { %v1340_v9 = vadd.f32 %v1339_v6, %v1338_v4  ;;  %2829 = vmatpush3.bf16.msra.mxu0 %v2828_v5  ;;  %v3120_v41 = vunpack.i.h.bf16 %v3118_v40  ;;  %v3119_v43 = vunpack.i.l.bf16 %v3118_v40  ;;  %v1905_v40 = vld [vmem:[%s3826_s9 + $0x48] sm:$0xff] }
 0x796   : > { %2830 = vmatprep.subr.bf16.mxu0 %v3167_v12 }
 0x797   : > { %v1341_v11 = vrot.slane %v1340_v9, 2  ;;  %v2849_v44 = vpack.c.bf16 %v3120_v41, %v3119_v43  ;;  %v2881_v41 = vpack.c.bf16 %v1902_v36, %v1896_v34  ;;  %v1934_v34 = vld [vmem:[%s3826_s9 + $0x130] sm:$0xff]  ;;  %v1947_v36 = vld [vmem:[%s3826_s9 + $0x198] sm:$0xff] }
 0x799   : > { %2832 = vmatpush3.bf16.msra.mxu0 %v2831_v10  ;;  %v1342_v13 = vadd.f32 %v1341_v11, %v1340_v9 }
 0x79a   : > { %2833 = vmatprep.subr.bf16.mxu0 %v3167_v12 }
 0x79b   : > { %v1343_v14 = vrot.slane %v1342_v13, 1 }
 0x79d   : > { %v1344_v17 = vadd.f32 %v1343_v14, %v1342_v13 }
 0x79f   : > { %v1345_v19 = vmul.f32 0.125, %v1344_v17  ;;  %v1815_v17 = vld [vmem:[%s3824_s7 + $0x10] sm:$0xff] }
 0x7a1   : > { %2670 = vmatmul.mubr.msk.f32.vlgmr.msra.gmra.mrb[6].mxu0 %vm736_vm4, %v1345_v19  ;;  %v1816_v19 = vld [vmem:[%s3824_s7 + $0x18] sm:$0xff] }
 0x7a2   : > { %2835 = vmatpush3.bf16.msra.mxu0 %v2834_v18  ;;  %2676 = vmatprep.mubr.msk.f32.mxu0 %vm3166_vm0, %v3165_v2  ;;  %v2868_v18 = vpack.c.bf16 %v1814_v16, %v1813_v15  ;;  %v2871_v22 = vpack.c.bf16 %v1816_v19, %v1815_v17  ;;  %v1910_v17 = vld [vmem:[%s3826_s9 + $0x70] sm:$0xff] }
 0x7a3   : > { %2836 = vmatprep.subr.bf16.mxu0 %v3167_v12 }
 0x874   : > { %v1439_v26 = vpop.f32.mrb[6].mxu0 }
 0x875   : > { %v2671_v29 = vpop.f32.mrb[7].mxu0  ;;  %2677 = vmatmul.mubr.msk.f32.vlgmr.msra.gmra.mrb[4].mxu0 %vm638_vm2, %v1439_v26  ;;  %v1819_v26 = vld [vmem:[%s3824_s7 + $0x30] sm:$0xff] }
 0x876   : > { %2839 = vmatpush3.bf16.xpose.msk.msra.mxu0 %vm3283_vm3, %v2837_v25  ;;  %2695 = vmatprep.mubr.msk.f32.mxu0 %vm3166_vm0, %v3165_v2  ;;  %v2874_v25 = vpack.c.bf16 %v1818_v24, %v1817_v23  ;;  %v2877_v29 = vpack.c.bf16 %v1820_v27, %v1819_v26  ;;  %v1929_v23 = vld [vmem:[%s3826_s9 + $0x108] sm:$0xff]  ;;  %v1922_v27 = vld [vmem:[%s3826_s9 + $0xd0] sm:$0xff] }
 0x877   : > { %2840 = vmatprep.subr.bf16.mxu0 %v3167_v12 }
 0x87e   : > { %2843 = vmatpush3.bf16.xpose.msk.msra.mxu0 %vm3283_vm3, %v2841_v32  ;;  %v1897_v32 = vld [vmem:[%s3826_s9 + $0x8] sm:$0xff] }
 0x87f   : > { %2844 = vmatprep.subr.bf16.mxu0 %v3167_v12 }
 0x886   : > { %2847 = vmatpush3.bf16.xpose.msk.msra.mxu0 %vm3283_vm3, %v2845_v38  ;;  %v1899_v38 = vld [vmem:[%s3826_s9 + $0x18] sm:$0xff] }
 0x887   : > { %2848 = vmatprep.subr.bf16.mxu0 %v3167_v12  ;;  %v2911_v43 = vpack.c.bf16 %v1905_v40, %v1899_v38  ;;  %v1953_v38 = vld [vmem:[%s3826_s9 + $0x1c8] sm:$0xff] }
 0x88e   : > { %2851 = vmatpush3.bf16.xpose.msk.msra.mxu0 %vm3283_vm3, %v2849_v44  ;;  %v1909_v44 = vld [vmem:[%s3826_s9 + $0x68] sm:$0xff] }
 0x88f   : > { %2864 = vmatprep.subr.bf16.mxu0 %v3167_v12 }
 0x895   : > { %2696 = vmatmul.mubr.msk.f32.vlgmr.msra.gmra.mrb[8].mxu0 %vm638_vm2, %v1518_v45  ;;  %v1915_v45 = vld [vmem:[%s3826_s9 + $0x98] sm:$0xff] }
 0x896   : > { %2721 = vmatprep.mubr.msk.f32.mxu0 %vm3166_vm0, %v3165_v2 }
 0x968   : > { %v1619_v46 = vpop.f32.mrb[8].mxu0 }
 0x969   : > { %v2697_v47 = vpop.f32.mrb[9].mxu0  ;;  %v1623_v48 = vsel %vm736_vm4, %v1619_v46, -inf }
 0x96a   : > { %1624 = vmax.xlane.f32.xlu0 %v1623_v48  ;;  %v1914_v47 = vld [vmem:[%s3826_s9 + $0x90] sm:$0xff]  ;;  %v2883_v48 = vpack.c.bf16 %v1915_v45, %v1909_v44  ;;  %v1952_v44 = vld [vmem:[%s3826_s9 + $0x1c0] sm:$0xff]  ;;  %v1959_v45 = vld [vmem:[%s3826_s9 + $0x1f8] sm:$0xff] }
 0x980   : > { %3122 = vrot.lane.b32.xlu0 %v3287_v21, %s3174_s19  ;;  %v636_v21 = vld [vmem:[%s3823_s6 + $0x30] sm:$0xff] }
 0x984   : > { %3132 = vrot.lane.b32.xlu0 %v3298_v35, %s3174_s19  ;;  %v637_v35 = vld [vmem:[%s3823_s6 + $0x38] sm:$0xff] }
 0x985   : > { %v2865_v55 = vpack.c.bf16 %v637_v35, %v636_v21  ;;  %v1932_v21 = vld [vmem:[%s3826_s9 + $0x120] sm:$0xff] }
 0x987   : > { %2866 = vmatpush3.bf16.msra.mxu0 %v2865_v55  ;;  %v1938_v55 = vld [vmem:[%s3826_s9 + $0x150] sm:$0xff] }
 0x9f7   : > { %v1625_v20 = vpop.xlane.xlu0 %1624 }
 0x9f8   : > { %v1626_v37 = vsub.f32 %v1619_v46, %v1625_v20  ;;  %v1908_v46 = vld [vmem:[%s3826_s9 + $0x60] sm:$0xff] }
 0x9f9   : > { %v2885_v20 = vpack.c.bf16 %v1914_v47, %v1908_v46  ;;  %v1965_v46 = vld [vmem:[%s3826_s9 + $0x228] sm:$0xff] }
 0x9fa   : > { %v1627_v49 = vmul.f32 1.442695, %v1626_v37  ;;  %v1921_v37 = vld [vmem:[%s3826_s9 + $0xc8] sm:$0xff] }
 0x9fb   : > { %v3123_v50 = vpop.permute.xlu0 %3122 }
 0x9fc   : > { %3153 = vpow2.f32 %v1627_v49  ;;  %v3125_v51 = vunpack.i.h.bf16 %v3123_v50  ;;  %v3124_v52 = vunpack.i.l.bf16 %v3123_v50  ;;  %v1927_v49 = vld [vmem:[%s3826_s9 + $0xf8] sm:$0xff] }
 0x9fd   : > { %v2887_v50 = vpack.c.bf16 %v1927_v49, %v1921_v37  ;;  %v1964_v37 = vld [vmem:[%s3826_s9 + $0x220] sm:$0xff]  ;;  %v1971_v49 = vld [vmem:[%s3826_s9 + $0x258] sm:$0xff] }
 0x9fe   : > { %v2853_v53 = vpack.c.bf16 %v3125_v51, %v3124_v52  ;;  %v1920_v51 = vld [vmem:[%s3826_s9 + $0xc0] sm:$0xff]  ;;  %v1926_v52 = vld [vmem:[%s3826_s9 + $0xf0] sm:$0xff] }
 0x9ff   : > { %v3133_v57 = vpop.permute.xlu0 %3132 }
 0xa00   : > { %2854 = vmatpush3.bf16.msra.mxu1 %v2853_v53  ;;  %v3135_v61 = vunpack.i.h.bf16 %v3133_v57  ;;  %v2889_v53 = vpack.c.bf16 %v1926_v52, %v1920_v51 }
 0xa01   : > { %2855 = vmatprep.subr.bf16.mxu1 %v3167_v12 }
 0xa06   : > { %v3154_v54 = vpop.eup %3153 }
 0xa07   : > { %v1629_v42 = vsel %vm736_vm4, %v3154_v54, 0.0 }
 0xa08   : > { %1630 = vadd.xlane.f32.xlu1 %v1629_v42  ;;  %v1939_v42 = vld [vmem:[%s3826_s9 + $0x158] sm:$0xff] }
 0xa19   : > { %3127 = vrot.lane.b32.xlu1 %v3294_v28, %s3174_s19  ;;  %v3134_v28 = vunpack.i.l.bf16 %v3133_v57  ;;  %v1945_v57 = vld [vmem:[%s3826_s9 + $0x188] sm:$0xff] }
 0xa1b   : > { %v2859_v0 = vpack.c.bf16 %v3135_v61, %v3134_v28  ;;  %v1950_v61 = vld [vmem:[%s3826_s9 + $0x1b0] sm:$0xff] }
 0xa1d   : > { %3137 = vrot.lane.b32.xlu1 %v3303_v39, %s3174_s19 }
 0xa95   : > { %v1631_v56 = vpop.xlane.xlu1 %1630 }
 0xa96   : > { %3155 = vrcp.f32 %v1631_v56  ;;  %v2893_v56 = vpack.c.bf16 %v1938_v55, %v1932_v21  ;;  %v1981_v21 = vld [vmem:[%s3826_s9 + $0x2a8] sm:$0xff] }
 0xa99   : > { %v3128_v58 = vpop.permute.xlu1 %3127 }
 0xa9a   : > { %v3130_v59 = vunpack.i.h.bf16 %v3128_v58  ;;  %v3129_v60 = vunpack.i.l.bf16 %v3128_v58  ;;  %v1951_v58 = vld [vmem:[%s3826_s9 + $0x1b8] sm:$0xff] }
 0xa9c   : > { %v2856_v62 = vpack.c.bf16 %v3130_v59, %v3129_v60  ;;  %v1944_v59 = vld [vmem:[%s3826_s9 + $0x180] sm:$0xff]  ;;  %v2895_v60 = vpack.c.bf16 %v1951_v58, %v1945_v57  ;;  %v1986_v57 = vld [vmem:[%s3826_s9 + $0x2d0] sm:$0xff]  ;;  %v1983_v58 = vld [vmem:[%s3826_s9 + $0x2b8] sm:$0xff] }
 0xa9d   : > { %v3138_v39 = vpop.permute.xlu1 %3137  ;;  %v2897_v28 = vpack.c.bf16 %v1950_v61, %v1944_v59  ;;  %v1982_v61 = vld [vmem:[%s3826_s9 + $0x2b0] sm:$0xff] }
 0xa9e   : > { %2857 = vmatpush3.bf16.msra.mxu1 %v2856_v62  ;;  %v3140_v1 = vunpack.i.h.bf16 %v3138_v39  ;;  %v3139_v3 = vunpack.i.l.bf16 %v3138_v39  ;;  %v1957_v62 = vld [vmem:[%s3826_s9 + $0x1e8] sm:$0xff]  ;;  %v1963_v39 = vld [vmem:[%s3826_s9 + $0x218] sm:$0xff] }
 0xa9f   : > { %2858 = vmatprep.subr.bf16.mxu1 %v3167_v12 }
 0xaa0   : > { %v3156_v63 = vpop.eup %3155  ;;  %v2862_v7 = vpack.c.bf16 %v3140_v1, %v3139_v3  ;;  %v1962_v1 = vld [vmem:[%s3826_s9 + $0x210] sm:$0xff] }
 0xaa1   : > { %v1633_v4 = vmul.f32 %v3156_v63, %v3154_v54  ;;  %v1933_v54 = vld [vmem:[%s3826_s9 + $0x128] sm:$0xff]  ;;  %v1956_v63 = vld [vmem:[%s3826_s9 + $0x1e0] sm:$0xff] }
 0xaa2   : > { %2860 = vmatpush3.bf16.msra.mxu1 %v2859_v0  ;;  %v2891_v35 = vpack.c.bf16 %v1939_v42, %v1933_v54  ;;  %v2899_v0 = vpack.c.bf16 %v1963_v39, %v1957_v62  ;;  %v2901_v3 = vpack.c.bf16 %v1962_v1, %v1956_v63  ;;  %v1976_v54 = vld [vmem:[%s3826_s9 + $0x280] sm:$0xff]  ;;  %v1901_v63 = vld [vmem:[%s3826_s9 + $0x28] sm:$0xff] }
 0xaa3   : > { %v1634_v5 = vsel %vm736_vm4, %v1633_v4, 0.0  ;;  %2861 = vmatprep.subr.bf16.mxu1 %v3167_v12  ;;  %v1969_v4 = vld [vmem:[%s3826_s9 + $0x248] sm:$0xff] }
 0xaa4   : > { %v1635_v6 = vrot.slane %v1634_v5, 4 }
 0xaa6   : > { %v1636_v8 = vadd.f32 %v1635_v6, %v1634_v5  ;;  %2863 = vmatpush3.bf16.msra.mxu1 %v2862_v7  ;;  %v1975_v5 = vld [vmem:[%s3826_s9 + $0x278] sm:$0xff]  ;;  %v1968_v6 = vld [vmem:[%s3826_s9 + $0x240] sm:$0xff] }
 0xaa7   : > { %2867 = vmatprep.subr.bf16.mxu1 %v3167_v12  ;;  %v2903_v7 = vpack.c.bf16 %v1975_v5, %v1969_v4  ;;  %v1900_v4 = vld [vmem:[%s3826_s9 + $0x20] sm:$0xff]  ;;  %v1906_v5 = vld [vmem:[%s3826_s9 + $0x50] sm:$0xff] }
 0xaa8   : > { %v1637_v9 = vrot.slane %v1636_v8, 2 }
 0xaaa   : > { %v1638_v10 = vadd.f32 %v1637_v9, %v1636_v8  ;;  %v1974_v8 = vld [vmem:[%s3826_s9 + $0x270] sm:$0xff] }
 0xaab   : > { %v2905_v9 = vpack.c.bf16 %v1974_v8, %v1968_v6  ;;  %v1919_v8 = vld [vmem:[%s3826_s9 + $0xb8] sm:$0xff] }
 0xaac   : > { %v1639_v11 = vrot.slane %v1638_v10, 1 }
 0xaae   : > { %v1640_v13 = vadd.f32 %v1639_v11, %v1638_v10  ;;  %v1898_v10 = vld [vmem:[%s3826_s9 + $0x10] sm:$0xff]  ;;  %v1904_v11 = vld [vmem:[%s3826_s9 + $0x40] sm:$0xff] }
 0xaaf   : > { %v2913_v15 = vpack.c.bf16 %v1904_v11, %v1898_v10  ;;  %v2945_v11 = vpack.c.bf16 %v1906_v5, %v1900_v4 }
 0xab0   : > { %v1641_v14 = vmul.f32 0.125, %v1640_v13  ;;  %v1911_v13 = vld [vmem:[%s3826_s9 + $0x78] sm:$0xff] }
 0xab2   : > { %2715 = vmatmul.mubr.msk.f32.vlgmr.msra.gmra.mrb[16].mxu1 %vm736_vm4, %v1641_v14  ;;  %v1917_v14 = vld [vmem:[%s3826_s9 + $0xa8] sm:$0xff] }
 0xab3   : > { %2740 = vmatprep.mubr.msk.f32.mxu1 %vm3166_vm0, %v3165_v2  ;;  %2869 = vmatpush3.bf16.msra.mxu1 %v2868_v18  ;;  %v2915_v16 = vpack.c.bf16 %v1917_v14, %v1911_v13  ;;  %v1916_v18 = vld [vmem:[%s3826_s9 + $0xa0] sm:$0xff] }
 0xab4   : > { %2870 = vmatprep.subr.bf16.mxu1 %v3167_v12 }
 0xab7   : > { %2872 = vmatpush3.bf16.msra.mxu1 %v2871_v22  ;;  %v1923_v22 = vld [vmem:[%s3826_s9 + $0xd8] sm:$0xff] }
 0xab8   : > { %2873 = vmatprep.subr.bf16.mxu1 %v3167_v12  ;;  %v2919_v26 = vpack.c.bf16 %v1929_v23, %v1923_v22  ;;  %v1924_v23 = vld [vmem:[%s3826_s9 + $0xe0] sm:$0xff] }
 0xabb   : > { %2875 = vmatpush3.bf16.msra.mxu1 %v2874_v25  ;;  %v2917_v25 = vpack.c.bf16 %v1916_v18, %v1910_v17  ;;  %v1925_v17 = vld [vmem:[%s3826_s9 + $0xe8] sm:$0xff]  ;;  %v1931_v18 = vld [vmem:[%s3826_s9 + $0x118] sm:$0xff] }
 0xabc   : > { %2876 = vmatprep.subr.bf16.mxu1 %v3167_v12  ;;  %v2879_v12 = vpack.c.bf16 %v1903_v33, %v1897_v32  ;;  %v2951_v22 = vpack.c.bf16 %v1931_v18, %v1925_v17 }
 0xabe   : > { %2880 = vmatprep.subr.bf16.mxu0 %v2879_v12  ;;  %v1940_v12 = vld [vmem:[%s3826_s9 + $0x160] sm:$0xff] }
 0xabf   : > { %2878 = vmatpush3.bf16.msra.mxu1 %v2877_v29  ;;  %v1928_v29 = vld [vmem:[%s3826_s9 + $0x100] sm:$0xff]  ;;  %v2925_v40 = vpack.c.bf16 %v1940_v12, %v1934_v34 }
 0xac0   : > { %2912 = vmatprep.subr.bf16.mxu1 %v2911_v43  ;;  %v2921_v32 = vpack.c.bf16 %v1928_v29, %v1922_v27  ;;  %v1946_v43 = vld [vmem:[%s3826_s9 + $0x190] sm:$0xff]  ;;  %v1936_v29 = vld [vmem:[%s3826_s9 + $0x140] sm:$0xff] }
 0xac1   : > { %v2929_v47 = vpack.c.bf16 %v1952_v44, %v1946_v43  ;;  %v1948_v12 = vld [vmem:[%s3826_s9 + $0x1a0] sm:$0xff] }
 0xac2   : > { %v1960_v44 = vld [vmem:[%s3826_s9 + $0x200] sm:$0xff] }
 0xb85   : > { %v1735_v30 = vpop.f32.mrb[16].mxu1 }
 0xb86   : > { %v2716_v31 = vpop.f32.mrb[17].mxu1  ;;  %2722 = vmatmul.mubr.msk.f32.vlgmr.msra.gmra.mrb[4].mxu0 %vm638_vm2, %v1735_v30  ;;  %v1935_v30 = vld [vmem:[%s3826_s9 + $0x138] sm:$0xff] }
 0xb87   : > { %2088 = vmatprep.mubr.f32.mxu0 %v3165_v2  ;;  %2882 = vmatpush1.bf16.msra.mxu0 %v2881_v41  ;;  %v1941_v31 = vld [vmem:[%s3826_s9 + $0x168] sm:$0xff]  ;;  %v2927_v41 = vpack.c.bf16 %v1953_v38, %v1947_v36  ;;  %v1954_v36 = vld [vmem:[%s3826_s9 + $0x1d0] sm:$0xff] }
 0xb88   : > { %2884 = vmatprep.subr.bf16.mxu0 %v2883_v48  ;;  %v2923_v33 = vpack.c.bf16 %v1941_v31, %v1935_v30  ;;  %v2931_v48 = vpack.c.bf16 %v1965_v46, %v1959_v45  ;;  %v1942_v30 = vld [vmem:[%s3826_s9 + $0x170] sm:$0xff]  ;;  %v1949_v31 = vld [vmem:[%s3826_s9 + $0x1a8] sm:$0xff] }
 0xb89   : > { %v1961_v38 = vld [vmem:[%s3826_s9 + $0x208] sm:$0xff]  ;;  %v1966_v45 = vld [vmem:[%s3826_s9 + $0x230] sm:$0xff] }
 0xb8a   : > { %v1973_v46 = vld [vmem:[%s3826_s9 + $0x268] sm:$0xff] }
 0xb8b   : > { %2886 = vmatpush1.bf16.msra.mxu0 %v2885_v20  ;;  %v1958_v20 = vld [vmem:[%s3826_s9 + $0x1f0] sm:$0xff] }
 0xb8c   : > { %2888 = vmatprep.subr.bf16.mxu0 %v2887_v50  ;;  %v1977_v50 = vld [vmem:[%s3826_s9 + $0x288] sm:$0xff]  ;;  %v2933_v51 = vpack.c.bf16 %v1964_v37, %v1958_v20  ;;  %v1972_v37 = vld [vmem:[%s3826_s9 + $0x260] sm:$0xff] }
 0xb8d   : > { %v2935_v52 = vpack.c.bf16 %v1977_v50, %v1971_v49  ;;  %v1978_v49 = vld [vmem:[%s3826_s9 + $0x290] sm:$0xff]  ;;  %v1985_v50 = vld [vmem:[%s3826_s9 + $0x2c8] sm:$0xff] }
 0xb8f   : > { %2890 = vmatpush1.bf16.msra.mxu0 %v2889_v53  ;;  %v1970_v53 = vld [vmem:[%s3826_s9 + $0x250] sm:$0xff] }
 0xb90   : > { %2892 = vmatprep.subr.bf16.mxu0 %v2891_v35  ;;  %v2937_v42 = vpack.c.bf16 %v1976_v54, %v1970_v53  ;;  %v1987_v35 = vld [vmem:[%s3826_s9 + $0x2d8] sm:$0xff]  ;;  %v1984_v54 = vld [vmem:[%s3826_s9 + $0x2c0] sm:$0xff] }
 0xb91   : > { %v2907_v55 = vpack.c.bf16 %v1987_v35, %v1981_v21  ;;  %v1994_v35 = vlaneseq }
 0xb93   : > { %2894 = vmatpush1.bf16.msra.mxu0 %v2893_v56  ;;  %v1980_v56 = vld [vmem:[%s3826_s9 + $0x2a0] sm:$0xff]  ;;  %vm2286_vm5 = vcmp.lt.s32.totalorder %v1994_v35, 768 }
 0xb94   : > { %2896 = vmatprep.subr.bf16.mxu0 %v2895_v60  ;;  %v2909_v59 = vpack.c.bf16 %v1986_v57, %v1980_v56  ;;  %v1989_v60 = vld [vmem:[%s3826_s9 + $0x2e8] sm:$0xff] }
 0xb95   : > { %v2939_v62 = vpack.c.bf16 %v1989_v60, %v1983_v58  ;;  %v1992_v58 = vld [vmem:[%s3827_s10] sm:$0x3f]  ;;  %v3175_v60 = vmov 1966171168  }
 0xb97   : > { %2898 = vmatpush1.bf16.msra.mxu0 %v2897_v28  ;;  %v1988_v28 = vld [vmem:[%s3826_s9 + $0x2e0] sm:$0xff] }
 0xb98   : > { %2900 = vmatprep.subr.bf16.mxu0 %v2899_v0  ;;  %v2941_v39 = vpack.c.bf16 %v1988_v28, %v1982_v61  ;;  %v1907_v0 = vld [vmem:[%s3826_s9 + $0x58] sm:$0xff]  ;;  %v2247_v61 = vunpack.c.l.s4 %v3175_v60 }
 0xb99   : > { %v2943_v1 = vpack.c.bf16 %v1907_v0, %v1901_v63 }
 0xb9a   : > { %v2248_v0 = vunpack.c.0.s8 %v2247_v61 }
 0xb9b   : > { %2902 = vmatpush1.bf16.msra.mxu0 %v2901_v3  ;;  %v1821_v3 = vld [vmem:[%s3825_s8] sm:$0x1] }
 0xb9c   : > { %2904 = vmatprep.subr.bf16.mxu0 %v2903_v7  ;;  %v1913_v7 = vld [vmem:[%s3826_s9 + $0x88] sm:$0xff] }
 0xb9d   : > { %v2947_v14 = vpack.c.bf16 %v1919_v8, %v1913_v7 }
 0xb9f   : > { %2906 = vmatpush1.bf16.msra.mxu0 %v2905_v9 }
 0xba0   : > { %2908 = vmatprep.subr.bf16.mxu0 %v2907_v55  ;;  %v1995_v55 = vshrl.u32 %v1994_v35, 7 }
 0xba2   : > { %v1996_v56 = vsub.s32 0, %v1995_v55  ;;  %v2004_v57 = vsub.s32 2, %v1995_v55  ;;  %v2008_v28 = vsub.s32 3, %v1995_v55  ;;  %v2012_v18 = vsub.s32 4, %v1995_v55 }
 0xba3   : > { %2910 = vmatpush1.bf16.msra.mxu0 %v2909_v59  ;;  %v2000_v59 = vsub.s32 1, %v1995_v55 }
 0xba4   : > { %2944 = vmatprep.subr.bf16.mxu0 %v2943_v1  ;;  %v2009_v1 = vrot.slane %v1992_v58, %v2008_v28 }
 0xba5   : > { %v2001_v63 = vrot.slane %v1992_v58, %v2000_v59 }
 0xc59   : > { %v1808_v19 = vpop.f32.mrb[4].mxu0 }
 0xc5a   : > { %v2723_v24 = vpop.f32.mrb[5].mxu0  ;;  %2741 = vmatmul.mubr.msk.f32.vlgmr.msra.gmra.mrb[18].mxu1 %vm736_vm4, %v1808_v19 }
 0xc5b   : > { %2914 = vmatpush1.bf16.msra.mxu1 %v2913_v15  ;;  %2159 = vmatprep.mubr.f32.mxu1 %v3165_v2  ;;  %v1912_v15 = vld [vmem:[%s3826_s9 + $0x80] sm:$0xff]  ;;  %v1930_v24 = vld [vmem:[%s3826_s9 + $0x110] sm:$0xff] }
 0xc5c   : > { %2916 = vmatprep.subr.bf16.mxu1 %v2915_v16  ;;  %v1918_v16 = vld [vmem:[%s3826_s9 + $0xb0] sm:$0xff] }
 0xc5d   : > { %v2949_v19 = vpack.c.bf16 %v1918_v16, %v1912_v15 }
 0xc5f   : > { %2918 = vmatpush1.bf16.msra.mxu1 %v2917_v25  ;;  %v1937_v25 = vld [vmem:[%s3826_s9 + $0x148] sm:$0xff] }
 0xc60   : > { %2920 = vmatprep.subr.bf16.mxu1 %v2919_v26  ;;  %v1943_v26 = vld [vmem:[%s3826_s9 + $0x178] sm:$0xff] }
 0xc61   : > { %v2955_v27 = vpack.c.bf16 %v1943_v26, %v1937_v25 }
 0xc63   : > { %2922 = vmatpush1.bf16.msra.mxu1 %v2921_v32  ;;  %v1955_v32 = vld [vmem:[%s3826_s9 + $0x1d8] sm:$0xff] }
 0xc64   : > { %2924 = vmatprep.subr.bf16.mxu1 %v2923_v33  ;;  %v2957_v33 = vpack.c.bf16 %v1942_v30, %v1936_v29  ;;  %v2959_v34 = vpack.c.bf16 %v1955_v32, %v1949_v31 }
 0xc67   : > { %2926 = vmatpush1.bf16.msra.mxu1 %v2925_v40  ;;  %v1967_v40 = vld [vmem:[%s3826_s9 + $0x238] sm:$0xff] }
 0xc68   : > { %2928 = vmatprep.subr.bf16.mxu1 %v2927_v41  ;;  %v2961_v41 = vpack.c.bf16 %v1954_v36, %v1948_v12  ;;  %v2963_v43 = vpack.c.bf16 %v1967_v40, %v1961_v38 }
 0xc6b   : > { %2930 = vmatpush1.bf16.msra.mxu1 %v2929_v47  ;;  %v1979_v47 = vld [vmem:[%s3826_s9 + $0x298] sm:$0xff] }
 0xc6c   : > { %2932 = vmatprep.subr.bf16.mxu1 %v2931_v48  ;;  %v2965_v48 = vpack.c.bf16 %v1966_v45, %v1960_v44  ;;  %v2967_v20 = vpack.c.bf16 %v1979_v47, %v1973_v46 }
 0xc6f   : > { %2934 = vmatpush1.bf16.msra.mxu1 %v2933_v51  ;;  %v1991_v51 = vld [vmem:[%s3826_s9 + $0x2f8] sm:$0xff] }
 0xc70   : > { %2936 = vmatprep.subr.bf16.mxu1 %v2935_v52  ;;  %v2969_v52 = vpack.c.bf16 %v1978_v49, %v1972_v37  ;;  %v2971_v53 = vpack.c.bf16 %v1991_v51, %v1985_v50 }
 0xc73   : > { %2938 = vmatpush1.bf16.msra.mxu1 %v2937_v42  ;;  %v1990_v42 = vld [vmem:[%s3826_s9 + $0x2f0] sm:$0xff] }
 0xc74   : > { %2940 = vmatprep.subr.bf16.mxu1 %v2939_v62  ;;  %v2973_v21 = vpack.c.bf16 %v1990_v42, %v1984_v54  ;;  %v1997_v62 = vrot.slane %v1992_v58, %v1996_v56 }
 0xc77   : > { %2942 = vmatpush1.bf16.msra.mxu1 %v2941_v39  ;;  %v2005_v39 = vrot.slane %v1992_v58, %v2004_v57 }
 0xd2d   : > { %v1891_v6 = vpop.f32.mrb[18].mxu1 }
 0xd2e   : > { %v1892_v9 = vadd.f32 %v1891_v6, %v1821_v3  ;;  %v2742_v10 = vpop.f32.mrb[19].mxu1 }
 0xd2f   : > { %v2251_v10 = vsub.s32 %v2248_v0, %v1995_v55 }
 0xd30   : > { %v1895_v13 = vmax.f32 %v1892_v9, 0.0 }
 0xd32   : > { %2089 = vmatmul.mubr.f32.vlgmr.msra.gmra.mrb[10].mxu0 %v1895_v13  ;;  %2160 = vmatmul.mubr.f32.vlgmr.msra.gmra.mrb[20].mxu1 %v1895_v13 }
 0xd33   : > { %2946 = vmatpush1.bf16.msra.mxu0 %v2945_v11  ;;  %2230 = vmatprep.mubr.f32.mxu0 %v3165_v2  ;;  %v2953_v2 = vpack.c.bf16 %v1930_v24, %v1924_v23 }
 0xd34   : > { %2948 = vmatprep.subr.bf16.mxu0 %v2947_v14 }
 0xd37   : > { %2950 = vmatpush1.bf16.msra.mxu0 %v2949_v19  ;;  %v2016_v19 = vsub.s32 5, %v1995_v55 }
 0xd38   : > { %2952 = vmatprep.subr.bf16.mxu0 %v2951_v22  ;;  %v2013_v22 = vrot.slane %v1992_v58, %v2012_v18 }
 0xd39   : > { %v2017_v23 = vrot.slane %v1992_v58, %v2016_v19 }
 0xd3b   : > { %2954 = vmatpush1.bf16.msra.mxu0 %v2953_v2 }
 0xd3c   : > { %2956 = vmatprep.subr.bf16.mxu0 %v2955_v27 }
 0xd3f   : > { %2958 = vmatpush1.bf16.msra.mxu0 %v2957_v33 }
 0xd40   : > { %2960 = vmatprep.subr.bf16.mxu0 %v2959_v34 }
 0xd43   : > { %2962 = vmatpush1.bf16.msra.mxu0 %v2961_v41 }
 0xd44   : > { %2964 = vmatprep.subr.bf16.mxu0 %v2963_v43 }
 0xd47   : > { %2966 = vmatpush1.bf16.msra.mxu0 %v2965_v48 }
 0xd48   : > { %2968 = vmatprep.subr.bf16.mxu0 %v2967_v20 }
 0xd4b   : > { %2970 = vmatpush1.bf16.msra.mxu0 %v2969_v52 }
 0xd4c   : > { %2972 = vmatprep.subr.bf16.mxu0 %v2971_v53 }
 0xd4f   : > { %2974 = vmatpush1.bf16.msra.mxu0 %v2973_v21 }
 0xd52   : > { %2231 = vmatmul.mubr.f32.vlgmr.msra.gmra.mrb[12].mxu0 %v1895_v13 }
 0xe05   : > { %v2090_v3 = vpop.f32.mrb[10].mxu0  ;;  %v2161_v4 = vpop.f32.mrb[20].mxu1 }
 0xe06   : > { %v2091_v5 = vadd.f32 %v2090_v3, %v1997_v62  ;;  %v2162_v6 = vadd.f32 %v2161_v4, %v2005_v39  ;;  %v2092_v7 = vpop.f32.mrb[11].mxu0  ;;  %v2163_v8 = vpop.f32.mrb[21].mxu1 }
 0xe07   : > { %v2093_v9 = vadd.f32 %v2092_v7, %v2001_v63  ;;  %v2164_v11 = vadd.f32 %v2163_v8, %v2009_v1 }
 0xe09   : > { %v2243_v13 = vcombine.low %v2091_v5, %v2093_v9  ;;  %v2244_v14 = vcombine.low %v2162_v6, %v2164_v11 }
 0xe0b   : > { %v2252_v15 = vrot.slane %v2243_v13, %v2251_v10  ;;  %v2259_v16 = vrot.slane %v2244_v14, %v2251_v10 }
 0xe0d   : > { %v2267_v17 = vcombine.low %v2252_v15, %v2259_v16 }
 0xe0f   : > { %v2274_v30 = vrot.slane %v2267_v17, %v2251_v10 }
 0xe25   : > { %v2232_v24 = vpop.f32.mrb[12].mxu0 }
 0xe26   : > { %v2233_v25 = vadd.f32 %v2232_v24, %v2013_v22  ;;  %v2234_v26 = vpop.f32.mrb[13].mxu0 }
 0xe27   : > { %v2235_v2 = vadd.f32 %v2234_v26, %v2017_v23 }
 0xe29   : > { %v2245_v27 = vcombine.low %v2233_v25, %v2235_v2 }
 0xe2b   : > { %v2266_v29 = vrot.slane %v2245_v27, %v2251_v10 }
 0xe2d   : > { %v2281_v31 = vrot.slane %v2266_v29, %v2251_v10 }
 0xe2f   : > { %v2282_v32 = vcombine.low %v2274_v30, %v2281_v31 }
 0xe31   : > { %2288 = vst.msk [vmem:[%s401_s16] sm:$0x3f] %vm2286_vm5, %v2282_v32 }
 0xe32 PF: > { %s21_s17 = sadd.s32 1, %s3163_s17  }
 0xe33   : > { %p18_p4 = scmp.ge.s32.totalorder %s21_s17, 4  }
 0xe35   :  { %20 = sbr.rel (!%p18_p4) target bundleno = 1 (0x1), region = 97 }

</bundles_post_ra>
